<compile_context>
chip_gen: v6e
topology: v6e:2x2x1
jax: 0.10.0
libtpu: 0.0.40
codegen_flags: <defaults>
</compile_context>

<pallas_src>
import functools

import jax
import jax.numpy as jnp
from jax import lax
from jax.experimental import pallas as pl
from jax.experimental.pallas import tpu as pltpu


def _pick_vmem_limit():
    """~75% of physical VMEM: ~96 MiB on 128-MiB parts, ~48 MiB on v7x."""
    try:
        cap = int(pltpu.get_tpu_info().vmem_capacity_bytes)
    except Exception:
        cap = 64 * 1024 * 1024
    return int(max(32 * 1024 * 1024, min(100 * 1024 * 1024, (cap * 3) // 4)))


_VMEM_LIMIT = _pick_vmem_limit()


def _row_tile(m, cap=512):
    """Largest divisor of m that is <= cap (prefer multiples of 8)."""
    if m <= cap:
        return m
    start = cap - (cap % 8)
    for t in range(start, 7, -8):
        if m % t == 0:
            return t
    for t in range(cap, 0, -1):
        if m % t == 0:
            return t
    return m


def _col_tile(n):
    for t in (256, 128):
        if n % t == 0:
            return t
    return n  # full extent (always legal; only hit for 64-wide / fc outputs)


# --------------------------------------------------------------------------
# Pallas kernel 1: fused matmul (1x1x1 convs, shortcut, stem im2col, fc)
#   out = [relu]( A @ B + bias [+ residual] ),  bf16 operands, f32 accumulate
# --------------------------------------------------------------------------
def _mm_kernel(a_ref, b_ref, bias_ref, o_ref, *, relu):
    acc = jnp.dot(a_ref[...], b_ref[...], preferred_element_type=jnp.float32)
    acc = acc + bias_ref[...]
    if relu:
        acc = jnp.maximum(acc, 0.0)
    o_ref[...] = acc.astype(o_ref.dtype)


def _mm_res_kernel(a_ref, b_ref, bias_ref, r_ref, o_ref, *, relu):
    acc = jnp.dot(a_ref[...], b_ref[...], preferred_element_type=jnp.float32)
    acc = acc + bias_ref[...]
    acc = acc + r_ref[...].astype(jnp.float32)
    if relu:
        acc = jnp.maximum(acc, 0.0)
    o_ref[...] = acc.astype(o_ref.dtype)


def matmul_fused(a, w, bias, *, residual=None, relu=False,
                 out_dtype=jnp.bfloat16):
    """(M, K) @ (K, N) + bias [+ residual] [-> ReLU].  Single K block (K<=2048)."""
    M, K = a.shape
    K2, Nc = w.shape
    assert K == K2
    tm = _row_tile(M)
    tn = _col_tile(Nc)
    a = a.astype(jnp.bfloat16)

    in_specs = [pl.BlockSpec((tm, K), lambda i, j: (i, 0)),
                pl.BlockSpec((K, tn), lambda i, j: (0, j)),
                pl.BlockSpec((1, tn), lambda i, j: (0, j))]
    args = [a, w, bias]
    if residual is not None:
        in_specs.append(pl.BlockSpec((tm, tn), lambda i, j: (i, j)))
        args.append(residual)                       # cast to f32 inside kernel
        kern = functools.partial(_mm_res_kernel, relu=relu)
    else:
        kern = functools.partial(_mm_kernel, relu=relu)

    out = pl.pallas_call(
        kern,
        out_shape=jax.ShapeDtypeStruct((M, Nc), out_dtype),
        grid_spec=pltpu.PrefetchScalarGridSpec(
            num_scalar_prefetch=0,
            grid=(M // tm, Nc // tn),
            in_specs=in_specs,
            out_specs=pl.BlockSpec((tm, tn), lambda i, j: (i, j))),
        compiler_params=pltpu.CompilerParams(
            dimension_semantics=("parallel", "parallel"),
            vmem_limit_bytes=_VMEM_LIMIT),
    )(*args)
    return out


# --------------------------------------------------------------------------
# Pallas kernel 2: general conv with whole-frame row banding.
#   Grid = (N*To frames, Cout tiles, kt temporal taps).  Each grid step loads
#   one (Hp*Wp, C) padded frame and accumulates all kh*kw spatial taps with
#   big (O(Ho*Wo), C) @ (C, tn) dots.  Temporal padding is handled by clamped
#   frame indices in the index_map + a pl.when skip (no jnp.pad along T).
# --------------------------------------------------------------------------
def _conv_frames(x, w_taps, bias, kdims, stride, tpad, relu,
                 out_dtype=jnp.bfloat16):
    N, T, Hp, Wp, C = x.shape           # H/W already padded by the caller
    kt, kh, kw = kdims
    st, sh, sw = stride
    assert st == 1
    pt = tpad
    Cout = w_taps.shape[-1]
    To = T + 2 * pt - kt + 1
    Ho = (Hp - kh) // sh + 1
    Wo = (Wp - kw) // sw + 1
    F = Hp * Wp
    tn = _col_tile(Cout)

    slab = (sh == 1 and sw == 1)        # stride-1: contiguous "slab" windows
    dense = slab and (Wo == Wp)         # no garbage columns (1x1 spatial taps)
    if not slab:
        assert kt == 1                  # strided convs in this net are kt == 1
    if kt == 1:
        assert pt == 0
    needs_tguard = pt > 0
    L = (Ho - 1) * Wp + Wo              # slab rows per tap matmul

    x4 = x.reshape(N * T, F, C)

    def x_idx(m, j, p):
        n = m // To
        to = m % To
        t_in = jnp.maximum(jnp.minimum(to - pt + p, T - 1), 0)
        return (n * T + t_in, 0, 0)

    if slab:
        def kern(x_ref, w_ref, b_ref, o_ref, acc_ref):
            p = pl.program_id(2)

            # register accumulation over the kh*kw taps (one scratch RMW/step)
            part = None
            for dh in range(kh):
                for dw in range(kw):
                    lhs = x_ref[pl.ds(dh * Wp + dw, L), :]
                    d = jnp.dot(lhs, w_ref[dh * kw + dw],
                                preferred_element_type=jnp.float32)
                    part = d if part is None else part + d

            if kt == 1:
                acc_ref[...] = part
            else:
                @pl.when(p == 0)
                def _():
                    acc_ref[...] = jnp.zeros_like(acc_ref)

                if needs_tguard:
                    to = pl.program_id(0) % To
                    t_in = to - pt + p
                    valid = jnp.logical_and(t_in >= 0, t_in < T)

                    @pl.when(valid)
                    def _():
                        acc_ref[...] += part
                else:
                    acc_ref[...] += part

            @pl.when(p == pl.num_programs(2) - 1)
            def _():
                b = b_ref[...]
                if dense:
                    y = acc_ref[...] + b
                    if relu:
                        y = jnp.maximum(y, 0.0)
                    o_ref[...] = y.astype(o_ref.dtype)
                else:
                    # drop the (Wp - Wo) garbage columns of the slab per row
                    for ho in range(Ho):
                        y = acc_ref[pl.ds(ho * Wp, Wo), :] + b
                        if relu:
                            y = jnp.maximum(y, 0.0)
                        o_ref[ho] = y.astype(o_ref.dtype)

        scratch = [pltpu.VMEM((L, tn), jnp.float32)]
    else:
        # strided fallback (stride-2 3x3 of the first s3/s4/s5 blocks and the
        # strided 1x1 shortcuts): per output row, strided window reads; still
        # avoids any materialized HBM gather of the subsampled activation.
        def kern(x_ref, w_ref, b_ref, o_ref):
            b = b_ref[...]
            for ho in range(Ho):
                part = None
                for dh in range(kh):
                    for dw in range(kw):
                        start = (ho * sh + dh) * Wp + dw
                        if sw == 1 or Wo == 1:
                            lhs = x_ref[pl.ds(start, Wo), :]
                        else:
                            lhs = x_ref[pl.ds(start, Wo, stride=sw), :]
                        d = jnp.dot(lhs, w_ref[dh * kw + dw],
                                    preferred_element_type=jnp.float32)
                        part = d if part is None else part + d
                y = part + b
                if relu:
                    y = jnp.maximum(y, 0.0)
                o_ref[pl.ds(ho * Wo, Wo), :] = y.astype(o_ref.dtype)

        scratch = []

    if slab and not dense:
        out_shape = jax.ShapeDtypeStruct((N * To, Ho, Wo, Cout), out_dtype)
        out_spec = pl.BlockSpec((None, Ho, Wo, tn), lambda m, j, p: (m, 0, 0, j))
    else:
        out_shape = jax.ShapeDtypeStruct((N * To, Ho * Wo, Cout), out_dtype)
        out_spec = pl.BlockSpec((None, Ho * Wo, tn), lambda m, j, p: (m, 0, j))

    out = pl.pallas_call(
        kern,
        out_shape=out_shape,
        grid_spec=pltpu.PrefetchScalarGridSpec(
            num_scalar_prefetch=0,
            grid=(N * To, Cout // tn, kt),
            in_specs=[
                pl.BlockSpec((None, F, C), x_idx),
                pl.BlockSpec((None, kh * kw, C, tn),
                             lambda m, j, p: (p, 0, 0, j)),
                pl.BlockSpec((1, tn), lambda m, j, p: (0, j)),
            ],
            out_specs=out_spec,
            scratch_shapes=scratch),
        compiler_params=pltpu.CompilerParams(
            dimension_semantics=("parallel", "parallel", "arbitrary"),
            vmem_limit_bytes=_VMEM_LIMIT),
    )(x4, w_taps, bias)
    return out.reshape(N, To, Ho, Wo, Cout)


def conv_apply(x, wp, *, stride=(1, 1, 1), padding=(0, 0, 0), relu=False,
               residual=None):
    """Conv (+ folded BN bias) [+ residual] [+ ReLU] on NTHWC input."""
    N, T, H, W, C = x.shape
    st, sh, sw = stride
    pt, ph, pw = padding

    if wp['kind'] == 'mm':                       # 1x1x1 conv
        Cout = wp['w'].shape[-1]
        if (st, sh, sw) == (1, 1, 1):            # fused matmul (bulk of FLOPs)
            assert padding == (0, 0, 0)
            a = x.reshape(N * T * H * W, C)
            res = None
            if residual is not None:
                res = residual.reshape(N * T * H * W, Cout)
            out = matmul_fused(a, wp['w'], wp['b'], residual=res, relu=relu)
            return out.reshape(N, T, H, W, Cout)
        # strided 1x1 shortcut: no materialized subsample, stride folded into
        # the in-kernel strided window reads.
        assert residual is None and st == 1
        w_taps = wp['w'].reshape(1, 1, C, Cout)
        return _conv_frames(x, w_taps, wp['b'], (1, 1, 1), (1, sh, sw), 0, relu)

    # general (tap) conv
    assert residual is None
    kt, kh, kw = wp['k']
    if ph or pw:
        x = jnp.pad(x, ((0, 0), (0, 0), (ph, ph), (pw, pw), (0, 0)))
    # temporal padding (pt) is handled inside the kernel (clamp + pl.when).
    return _conv_frames(x, wp['w'], wp['b'], (kt, kh, kw), (st, sh, sw), pt,
                        relu)


def stem_apply(x, wp, *, stride, padding):
    """Stem 5x7x7 conv (Cin=3): im2col -> single fused matmul (K padded to 768)."""
    N, T, H, W, C = x.shape
    kt, kh, kw = wp['k']
    st, sh, sw = stride
    pt, ph, pw = padding
    xp = jnp.pad(x, ((0, 0), (pt, pt), (ph, ph), (pw, pw), (0, 0)))
    Tp, Hp, Wp = T + 2 * pt, H + 2 * ph, W + 2 * pw
    To = (Tp - kt) // st + 1
    Ho = (Hp - kh) // sh + 1
    Wo = (Wp - kw) // sw + 1
    cols = []
    for dt in range(kt):
        for dh in range(kh):
            for dw in range(kw):
                win = lax.slice(
                    xp, (0, dt, dh, dw, 0),
                    (N, dt + (To - 1) * st + 1, dh + (Ho - 1) * sh + 1,
                     dw + (Wo - 1) * sw + 1, C),
                    (1, st, sh, sw, 1))
                cols.append(win)                       # (N, To, Ho, Wo, C)
    patches = jnp.concatenate(cols, axis=-1)
    patches = patches.reshape(N * To * Ho * Wo, kt * kh * kw * C)
    Kp = wp['w'].shape[0]
    if Kp > patches.shape[1]:
        patches = jnp.pad(patches, ((0, 0), (0, Kp - patches.shape[1])))
    Cout = wp['w'].shape[-1]
    out = matmul_fused(patches, wp['w'], wp['b'], relu=True)
    return out.reshape(N, To, Ho, Wo, Cout)


# --------------------------------------------------------------------------
# Pallas kernel 3: batched non-local attention (softmax instantiation).
#   phi is pre-transposed to (B, D, Lk) so scores are a plain (tq,D)@(D,Lk) dot.
# --------------------------------------------------------------------------
def nonlocal_attention(theta, phi_t, g, scale):
    B, Lq, D = theta.shape
    Lk = g.shape[1]
    tq = Lq
    for t in (512, 256, 128):
        if Lq % t == 0:
            tq = t
            break

    def kern(t_ref, p_ref, g_ref, o_ref):
        s = jnp.dot(t_ref[...], p_ref[...],
                    preferred_element_type=jnp.float32) * scale
        m = jnp.max(s, axis=-1, keepdims=True)
        e = jnp.exp(s - m)
        l = jnp.sum(e, axis=-1, keepdims=True)
        a = e * pl.reciprocal(l, approx=True)
        o = jnp.dot(a.astype(g_ref.dtype), g_ref[...],
                    preferred_element_type=jnp.float32)
        o_ref[...] = o.astype(o_ref.dtype)

    out = pl.pallas_call(
        kern,
        out_shape=jax.ShapeDtypeStruct((B, Lq, D), jnp.bfloat16),
        grid_spec=pltpu.PrefetchScalarGridSpec(
            num_scalar_prefetch=0,
            grid=(B, Lq // tq),
            in_specs=[pl.BlockSpec((None, tq, D), lambda b, i: (b, i, 0)),
                      pl.BlockSpec((None, D, Lk), lambda b, i: (b, 0, 0)),
                      pl.BlockSpec((None, Lk, D), lambda b, i: (b, 0, 0))],
            out_specs=pl.BlockSpec((None, tq, D), lambda b, i: (b, i, 0))),
        compiler_params=pltpu.CompilerParams(
            dimension_semantics=("parallel", "parallel"),
            vmem_limit_bytes=_VMEM_LIMIT),
    )(theta.astype(jnp.bfloat16), phi_t.astype(jnp.bfloat16),
      g.astype(jnp.bfloat16))
    return out


# --------------------------------------------------------------------------
# Non-Pallas glue (cheap vs the conv/attention matmuls)
# --------------------------------------------------------------------------
def max_pool3d(x, kernel, stride, padding):
    init = jnp.array(-jnp.inf, dtype=x.dtype)
    return lax.reduce_window(
        x, init, lax.max,
        window_dimensions=(1, kernel[0], kernel[1], kernel[2], 1),
        window_strides=(1, stride[0], stride[1], stride[2], 1),
        padding=((0, 0), (padding[0], padding[0]), (padding[1], padding[1]),
                 (padding[2], padding[2]), (0, 0)))


# --------------------------------------------------------------------------
# Network blocks
# --------------------------------------------------------------------------
def bottleneck_block(x, p):
    """SlowFast BottleneckTransform + residual (stride_1x1=False, dilation=1)."""
    s = p['stride']
    tk = p['temp_k']
    if p['has_shortcut']:
        sc = conv_apply(x, p['sc'], stride=(1, s, s), relu=False)
    else:
        sc = x
    h = conv_apply(x, p['a'], padding=(tk // 2, 0, 0), relu=True)
    h = conv_apply(h, p['b'], stride=(1, s, s), padding=(0, 1, 1), relu=True)
    # c-conv: BN folded, residual add + ReLU fused into the matmul epilogue
    return conv_apply(h, p['c'], relu=True, residual=sc)


def nonlocal_block(x, p):
    """Non-local block (softmax instantiation, spatial max-pool [1,2,2] on phi/g)."""
    N, T, H, W, C = x.shape
    inner = C // 2
    theta = conv_apply(x, p['theta'])
    xpool = max_pool3d(x, (1, 2, 2), (1, 2, 2), (0, 0, 0))
    phi = conv_apply(xpool, p['phi'])
    g = conv_apply(xpool, p['g'])
    Tk, Hk, Wk = xpool.shape[1:4]
    Lk = Tk * Hk * Wk
    phi_t = jnp.swapaxes(phi.reshape(N, Lk, inner), 1, 2)      # (N, inner, Lk)
    o = nonlocal_attention(theta.reshape(N, T * H * W, inner), phi_t,
                           g.reshape(N, Lk, inner), scale=inner ** -0.5)
    o = o.reshape(N, T, H, W, inner)
    # out-conv: folded BN, residual x fused in the epilogue (no ReLU)
    return conv_apply(o, p['out'], relu=False, residual=x)


def res_stage(x, stage):
    for blk in stage['blocks']:
        x = bottleneck_block(x, blk)
        if blk['nl'] is not None:
            x = nonlocal_block(x, blk['nl'])
    return x


# --------------------------------------------------------------------------
# Deterministic parameter construction (BN folded + packed to kernel layout)
# --------------------------------------------------------------------------
class ParamGen:
    def __init__(self, seed):
        self._key = jax.random.PRNGKey(seed)
        self._n = 0

    def key(self):
        self._n += 1
        return jax.random.fold_in(self._key, self._n)


def init_conv(pg, c_out, c_in, kt, kh, kw):
    fan_in = c_in * kt * kh * kw
    std = (2.0 / fan_in) ** 0.5
    return std * jax.random.normal(pg.key(), (c_out, c_in, kt, kh, kw),
                                   jnp.float32)


def init_bn(pg, c):
    return dict(
        gamma=1.0 + 0.01 * jax.random.normal(pg.key(), (c,), jnp.float32),
        beta=0.01 * jax.random.normal(pg.key(), (c,), jnp.float32),
        mean=jnp.zeros((c,), jnp.float32),
        var=jnp.ones((c,), jnp.float32))


def pack_conv(w, bias):
    """Pre-transform a (Cout, Cin, kt, kh, kw) weight to the kernel layout."""
    Cout, Cin, kt, kh, kw = w.shape
    b = bias.reshape(1, Cout).astype(jnp.float32)
    if (kt, kh, kw) == (1, 1, 1):
        wm = w.reshape(Cout, Cin).T
        return dict(kind='mm', w=wm.astype(jnp.bfloat16), b=b)
    wt = jnp.transpose(w, (2, 3, 4, 1, 0)).reshape(kt, kh * kw, Cin, Cout)
    return dict(kind='tap', w=wt.astype(jnp.bfloat16), b=b, k=(kt, kh, kw))


def _fold_bn(w, bn, conv_bias=None):
    s = bn['gamma'] / jnp.sqrt(bn['var'] + 1e-5)
    wf = w * s[:, None, None, None, None]
    cb = jnp.zeros_like(bn['beta']) if conv_bias is None else conv_bias
    bias = (cb - bn['mean']) * s + bn['beta']
    return wf, bias


def pack_conv_bn(w, bn, conv_bias=None):
    """Fold inference BatchNorm3d (eps=1e-5) into the conv, then pack."""
    wf, bias = _fold_bn(w, bn, conv_bias)
    return pack_conv(wf, bias)


def pack_stem_bn(w, bn):
    """Stem: fold BN and pack to im2col matmul layout (K padded to 128-mult)."""
    wf, bias = _fold_bn(w, bn)
    Cout, Cin, kt, kh, kw = w.shape
    wm = jnp.transpose(wf, (2, 3, 4, 1, 0)).reshape(kt * kh * kw * Cin, Cout)
    Kp = ((wm.shape[0] + 127) // 128) * 128
    wm = jnp.pad(wm, ((0, Kp - wm.shape[0]), (0, 0)))
    return dict(kind='im2col', w=wm.astype(jnp.bfloat16),
                b=bias.reshape(1, Cout).astype(jnp.float32), k=(kt, kh, kw))


def build_stage(pg, dim_in, dim_out, dim_inner, temp_kernel_sizes, stride,
                num_blocks, num_block_temp_kernel, nonlocal_inds):
    temp_list = ((temp_kernel_sizes * num_blocks)[:num_block_temp_kernel]
                 + [1] * (num_blocks - num_block_temp_kernel))
    blocks = []
    for i in range(num_blocks):
        din = dim_in if i == 0 else dim_out
        st = stride if i == 0 else 1
        tk = temp_list[i]
        blk = dict(temp_k=tk, stride=st,
                   has_shortcut=(din != dim_out or st != 1))
        blk['a'] = pack_conv_bn(init_conv(pg, dim_inner, din, tk, 1, 1),
                                init_bn(pg, dim_inner))
        blk['b'] = pack_conv_bn(init_conv(pg, dim_inner, dim_inner, 1, 3, 3),
                                init_bn(pg, dim_inner))
        blk['c'] = pack_conv_bn(init_conv(pg, dim_out, dim_inner, 1, 1, 1),
                                init_bn(pg, dim_out))
        if blk['has_shortcut']:
            blk['sc'] = pack_conv_bn(init_conv(pg, dim_out, din, 1, 1, 1),
                                     init_bn(pg, dim_out))
        if i in nonlocal_inds:
            inner = dim_out // 2
            blk['nl'] = dict(
                theta=pack_conv(init_conv(pg, inner, dim_out, 1, 1, 1),
                                jnp.zeros((inner,), jnp.float32)),
                phi=pack_conv(init_conv(pg, inner, dim_out, 1, 1, 1),
                              jnp.zeros((inner,), jnp.float32)),
                g=pack_conv(init_conv(pg, inner, dim_out, 1, 1, 1),
                            jnp.zeros((inner,), jnp.float32)),
                out=pack_conv_bn(init_conv(pg, dim_out, inner, 1, 1, 1),
                                 init_bn(pg, dim_out),
                                 conv_bias=jnp.zeros((dim_out,), jnp.float32)))
        else:
            blk['nl'] = None
        blocks.append(blk)
    return dict(blocks=blocks)


def build_resnet_params(seed=0, num_classes=10):
    pg = ParamGen(seed)
    d2, d3, d4, d5 = (3, 4, 6, 3)                 # _MODEL_STAGE_DEPTH[50]
    w = 64                                        # width_per_group
    dim_inner = 64
    params = {}
    # s1: conv (5,7,7), stride (1,2,2), pad (2,3,3)  (temp_kernel[0][0] = [5])
    params['stem'] = pack_stem_bn(init_conv(pg, w, 3, 5, 7, 7), init_bn(pg, w))
    # temp kernel basis per stage: s2 [3], s3/s4 [3,1], s5 [1,3]
    params['s2'] = build_stage(pg, w, w * 4, dim_inner, [3], 1, d2, d2, [])
    params['s3'] = build_stage(pg, w * 4, w * 8, dim_inner * 2, [3, 1], 2, d3, d3, [1, 3])
    params['s4'] = build_stage(pg, w * 8, w * 16, dim_inner * 4, [3, 1], 2, d4, d4, [1, 3, 5])
    params['s5'] = build_stage(pg, w * 16, w * 32, dim_inner * 8, [1, 3], 2, d5, d5, [])
    fc_w = 0.01 * jax.random.normal(pg.key(), (num_classes, w * 32), jnp.float32)
    params['fc_w'] = fc_w.T.astype(jnp.bfloat16)            # (2048, num_classes)
    params['fc_b'] = jnp.zeros((1, num_classes), jnp.float32)
    return params


# --------------------------------------------------------------------------
# Full forward (cfg.MODEL.SSF_ENABLE = False, LOSS_FUNC = 'cross_entropy')
# --------------------------------------------------------------------------
def resnet_forward(x_ncthw, params):
    # NCTHW (PyTorch) -> NTHWC (channels-last), bf16 activations end-to-end
    x = jnp.transpose(x_ncthw, (0, 2, 3, 4, 1)).astype(jnp.bfloat16)

    # s1: stem conv + (folded) BN + ReLU + maxpool[1,3,3]/s[1,2,2]/p[0,1,1]
    x = stem_apply(x, params['stem'], stride=(1, 2, 2), padding=(2, 3, 3))
    x = max_pool3d(x, (1, 3, 3), (1, 2, 2), (0, 1, 1))

    x = res_stage(x, params['s2'])
    # pathway0_pool: MaxPool3d kernel/stride [2,1,1] (i3d pool)
    x = max_pool3d(x, (2, 1, 1), (2, 1, 1), (0, 0, 0))
    x = res_stage(x, params['s3'])
    x = res_stage(x, params['s4'])
    x = res_stage(x, params['s5'])

    # head: AdaptiveAvgPool3d((1,1,1)) -> fc (dropout = identity at inference)
    N, T, H, W, C = x.shape
    feat = jnp.mean(x.astype(jnp.float32).reshape(N, T * H * W, C), axis=1)
    logits = matmul_fused(feat, params['fc_w'], params['fc_b'],
                          relu=False, out_dtype=jnp.float32)
    return [logits]   # LOSS_FUNC == 'cross_entropy'


# --------------------------------------------------------------------------
if __name__ == "__main__":
    NUM_CLASSES = 10
    key = jax.random.PRNGKey(0)
    # small video clip: batch=1, 3 channels, 4 frames, 32x32 spatial (NCTHW)
    x = jax.random.normal(key, (1, 3, 4, 32, 32), jnp.float32)

    params = build_resnet_params(seed=0, num_classes=NUM_CLASSES)
    out = resnet_forward(x, params)
    logits = jax.block_until_ready(out[0])

    assert logits.shape == (1, NUM_CLASSES), logits.shape
    assert bool(jnp.all(jnp.isfinite(logits)))
    print("KERNEL_OK")
</pallas_src>

<mosaic_0001>
module attributes {stable_mosaic.version = 11 : i64} {
  func.func @_mm_kernel(%arg0: i32, %arg1: i32, %arg2: memref<512x768xbf16, #tpu.memory_space<vmem>>, %arg3: memref<768x64xbf16, #tpu.memory_space<vmem>>, %arg4: memref<1x64xf32, #tpu.memory_space<vmem>>, %arg5: memref<512x64xbf16, #tpu.memory_space<vmem>>) attributes {dimension_semantics = [#tpu.dimension_semantics<parallel>, #tpu.dimension_semantics<parallel>], iteration_bounds = array<i64: 2, 1>, scalar_prefetch = 0 : i64, scratch_operands = 0 : i64, tpu.core_type = #tpu.core_type<tc>, window_params = [{transform_indices = @transform_0, window_bounds = array<i64: 512, 768>}, {transform_indices = @transform_1, window_bounds = array<i64: 768, 64>}, {transform_indices = @transform_2, window_bounds = array<i64: 1, 64>}, {transform_indices = @transform_3, window_bounds = array<i64: 512, 64>}]} {
    %c0 = arith.constant 0 : index
    %c0_0 = arith.constant 0 : index
    %0 = vector.load %arg2[%c0, %c0_0] : memref<512x768xbf16, #tpu.memory_space<vmem>>, vector<512x768xbf16>
    %c0_1 = arith.constant 0 : index
    %c0_2 = arith.constant 0 : index
    %1 = vector.load %arg3[%c0_1, %c0_2] : memref<768x64xbf16, #tpu.memory_space<vmem>>, vector<768x64xbf16>
    %cst = arith.constant dense<0.000000e+00> : vector<512x64xf32>
    %2 = tpu.matmul %0, %1, %cst {dimension_numbers = #tpu.dot_dimension_numbers<[1], [0], [0], [1], [0, 0, 1, 1], [], []>} : vector<512x768xbf16>, vector<768x64xbf16>, vector<512x64xf32> -> vector<512x64xf32>
    %c0_3 = arith.constant 0 : index
    %c0_4 = arith.constant 0 : index
    %3 = vector.load %arg4[%c0_3, %c0_4] : memref<1x64xf32, #tpu.memory_space<vmem>>, vector<1x64xf32>
    %4 = vector.broadcast %3 : vector<1x64xf32> to vector<512x64xf32>
    %5 = arith.addf %2, %4 : vector<512x64xf32>
    %cst_5 = arith.constant 0.000000e+00 : f32
    %6 = vector.broadcast %cst_5 : f32 to vector<512x64xf32>
    %7 = arith.maximumf %5, %6 : vector<512x64xf32>
    %8 = arith.truncf %7 : vector<512x64xf32> to vector<512x64xbf16>
    %c0_6 = arith.constant 0 : index
    %c0_7 = arith.constant 0 : index
    %9 = vector.load %arg5[%c0_6, %c0_7] : memref<512x64xbf16, #tpu.memory_space<vmem>>, vector<512x64xbf16>
    tpu.vector_store %arg5[%c0_6, %c0_7], %8 {strides = array<i32>} : memref<512x64xbf16, #tpu.memory_space<vmem>>, vector<512x64xbf16>,
    return
  }
  func.func @transform_0(%arg0: i32, %arg1: i32) -> (i32, i32) {
    %c0_i32 = arith.constant 0 : i32
    %c0_i32_0 = arith.constant 0 : i32
    return %arg0, %c0_i32 : i32, i32
  }
  func.func @transform_1(%arg0: i32, %arg1: i32) -> (i32, i32) {
    %c0_i32 = arith.constant 0 : i32
    %c0_i32_0 = arith.constant 0 : i32
    return %c0_i32, %arg1 : i32, i32
  }
  func.func @transform_2(%arg0: i32, %arg1: i32) -> (i32, i32) {
    %c0_i32 = arith.constant 0 : i32
    %c0_i32_0 = arith.constant 0 : i32
    return %c0_i32, %arg1 : i32, i32
  }
  func.func @transform_3(%arg0: i32, %arg1: i32) -> (i32, i32) {
    %c0_i32 = arith.constant 0 : i32
    return %arg0, %arg1 : i32, i32
  }
}

</mosaic_0001>

<bundles_post_ra>
// kernel: tpu_custom_call.1
= control target key start
LH: loop header
LB: loop body
LE: loop exit
PB: predicated region body
PF: predicated region fallthrough
CT: control target
= control target key end

     0   :  { %8 = vsyncpa [#allocation3], 0  ;;  %s5032_s0 = inlined_call_operand.hbm [shape: bf16[1024,768], index: 0, kind: input, shape index: {}]   ;;  %s5033_s1 = inlined_call_operand.vmem [shape: bf16[768,64], index: 1, kind: input, shape index: {}]   ;;  %s5034_s2 = inlined_call_operand.hbm [shape: f32[1,64], index: 2, kind: input, shape index: {}]   ;;  %s5035_s3 = inlined_call_operand.vmem [shape: bf16[1024,64], index: 3, kind: output, shape index: {}]  }
   0x1   :  { %10 = vsyncpa [#allocation3 + $0x1], 0 }
   0x2   :  { %11 = vsyncpa [#allocation5], 0  ;;  %s4120_s12 = smov 0   ;;  %s4122_s13 = smov 0  }
   0x3   :  { %s4124_s14 = smov 0   ;;  %s4126_s15 = smov 0  }
   0x4   :  { %s4128_s16 = smov 0   ;;  %s4130_s17 = smov 0  }
   0x5 LB: > { %s3160_s18 = sadd.s32 4294967295, %s4093_s17   ;;  %s36_s19 = sadd.s32 1, %s4081_s14  ;;  %s4093_s17 = sphi %s4130_s17, %s17_s17   ;;  %s4089_s16 = sphi %s4128_s16, %s5087_s16   ;;  %s4085_s15 = sphi %s4126_s15, %s5086_s15   ;;  %s4081_s14 = sphi %s4124_s14, %s5085_s14   ;;  %s4077_s13 = sphi %s4122_s13, %s5084_s13   ;;  %s4073_s12 = sphi %s4120_s12, %s5083_s12  }
   0x6   : > { %p43_p0 = scmp.ne.s32.totalorder %s4081_s14, %s4077_s13  ;;  %p44_p1 = scmp.eq.s32.totalorder %s4093_s17, 0 }
   0x7   : > { %p49_p2 = scmp.ne.s32.totalorder %s4077_s13, %s4073_s12  ;;  %p4154_p3 = scmp.eq.s32.totalorder %s3160_s18, 0 }
   0x8   : > { %p45_p4 = por %p44_p1, %p43_p0  ;;  %p3162_p5 = scmp.ge.s32.totalorder %s4093_s17, 1 }
   0x9   : > { %p4161_p6 = por %p4154_p3, %p49_p2  ;;  %p140_p7 = scmp.lt.s32.totalorder %s4093_s17, 3 }
   0xa   : > { %s4095_s23 = smov [#allocation4]   ;;  %p3594_p10 = scmp.lt.s32.totalorder %s4093_s17, 2 }
   0xb   : > { %s5039_s21 = scalar_select %p4161_p6, 1, 0 }
   0xc   : > { %p4166_p8 = pnand %p3162_p5, %p140_p7  ;;  %s162_s24 = sshll.u32 %s4095_s23, 4  ;;  %s163_s24 = int_to_ptr.vmem [resolvable:$true] %s162_s24 }
   0xd   : > { %s173_s25 = sand.u32 1, %s4081_s14   ;;  %p4176_p12 = pnand %p3594_p10, %p45_p4 }
   0xe   : > { %s5040_s22 = scalar_select %p4166_p8, 1, 0 }
   0xf   : > { %p3585_p9 = pneg %p4166_p8  ;;  %s3996_s27 = scalar_lea.vmem %s163_s24, 16 }
  0x10   : > { %p3997_p0 = scmp.ne.s32.totalorder %s163_s24, %s3996_s27  ;;  %s4003_s28 = scalar_lea.vmem %s163_s24, 32 }
  0x11   : > { %p3586_p11 = pnand %p3585_p9, %p4154_p3  ;;  %p4004_p5 = scmp.lt.s32.totalorder %s163_s24, %s163_s24 }
  0x12   : > { %p4005_p7 = scmp.lt.s32.totalorder %s4003_s28, %s3996_s27 }
  0x13   : > { %p3987_p13 = pneg %p3586_p11 }
  0x14   : > { %p4006_p6 = por %p4005_p7, %p4004_p5 }
  0x15   : > { %p3999_p1 = pnand %p3997_p0, %p3987_p13 }
  0x17   : > { %p4000_p2 = pneg %p3999_p1 }
  0x19   : > { %p4007_p8 = pnand %p4006_p6, %p4000_p2 }
  0x1b   : > { %4010 = shalt.err (!%p4007_p8)
}
  0x1c   : > { %3588 = dma.hbm_to_vmem [thread:$0]  (!%p3586_p11), %s5034_s2, 16, %s163_s24, [#allocation5]  }
  0x1d   : > { %s29_s4 = sadd.s32 1, %s4089_s16  ;;  %s3576_s5 = smul.u32 1536, %s173_s25 }
  0x1e   : > { %p31_p4 = scmp.ge.s32.totalorder %s29_s4, 2  ;;  %s3577_s6 = smul.u32 24576, %s4089_s16 }
  0x1f   : > { %s177_s10 = scalar_lea.vmem [#allocation2], %s3576_s5  ;;  %s174_s23 = scalar_lea.sflag [#allocation3], %s173_s25 }
  0x20   : > { %s5089_s4 = smov (%p31_p4, %s29_s4), 0  ;;  %s184_s9 = scalar_lea.hbm %s5032_s0, %s3577_s6 }
  0x21   : > { %s185_s11 = sshll.u32 %s177_s10, 4  ;;  %s33_s12 = ssub.s32 %s4089_s16, %s5089_s4  ;;  %s186_s11 = int_to_ptr.vmem [resolvable:$true] %s185_s11 }
  0x22   : > { %p4192_p6 = scmp.eq.s32.totalorder %s33_s12, 0  ;;  %p4013_p8 = pneg %p4176_p12 }
  0x23   : > { %s4024_s24 = scalar_lea.vmem %s186_s11, 24576  ;;  %s4096_s27 = smov [#allocation2]  }
  0x24   : > { %p4025_p9 = scmp.ne.s32.totalorder %s186_s11, %s4024_s24  ;;  %s4029_s28 = sshll.u32 %s4096_s27, 4  ;;  %s4030_s28 = int_to_ptr.vmem [resolvable:$false] %s4029_s28 }
  0x25   : > { %s4031_s29 = scalar_lea.vmem %s4030_s28, 49152  ;;  %p4032_p13 = scmp.lt.s32.totalorder %s186_s11, %s4030_s28 }
  0x26   : > { %p4027_p10 = pnand %p4025_p9, %p4013_p8  ;;  %p4033_p0 = scmp.lt.s32.totalorder %s4031_s29, %s4024_s24 }
  0x28   : > { %p4028_p11 = pneg %p4027_p10  ;;  %p4034_p1 = por %p4033_p0, %p4032_p13 }
  0x2a   : > { %p4035_p2 = pnand %p4034_p1, %p4028_p11 }
  0x2c   : > { %4038 = shalt.err (!%p4035_p2)
}
  0x2d   : > { %s4097_s30 = smov 384   ;;  %s4098_s25 = smov 24  }
  0x2e   : > { %3592 = dma.hbm_to_vmem [thread:$0]  (!%p4176_p12), %s184_s9, 24576, %s186_s11, %s174_s23, %s4097_s30, %s4097_s30, %s4098_s25  }
  0x2f   : > { %s4205_s5 = scalar_select %p4192_p6, %s4081_s14, %s36_s19  }
  0x30   : > { %p5043_p5 = scmp.ne.s32.totalorder %s5040_s22, 0 }
  0x32   : > { %197 = sbr.rel (%p5043_p5) target bundleno = 709 (0x2c5), region = 32 }
  0x37   : > { %s199_s6 = sand.u32 1, %s4077_s13   ;;  %p5044_p7 = scmp.ne.s32.totalorder %s5039_s21, 0 }
  0x38   : > { %s3578_s7 = smul.u32 1536, %s199_s6  ;;  %s200_s8 = scalar_lea.sflag [#allocation3], %s199_s6 }
  0x3a   : > { %s4210_s10 = scalar_lea.vmem [#allocation2], %s3578_s7 }
  0x3b   : > { %4064 = dma.done.wait (%p5044_p7), %s200_s8, 24576  }
  0x3c   : > { %4066 = vsyncadd (%p5044_p7), %s200_s8, 4294942720 }
  0x3d   : > { %4068 = dma.done.wait (%p4154_p3), [#allocation5], 16  }
  0x3e   : > { %4070 = vsyncadd (%p4154_p3), [#allocation5], 4294967280  ;;  %v4099_v0 = vmov 0   ;;  %v3648_v1 = vld [vmem:[%s5033_s1 + $0x38] sm:$0xff]   ;;  %v3649_v2 = vld [vmem:[%s5033_s1 + $0x30] sm:$0xff]   ;;  %s3171_s22 = sshll.u32 %s4085_s15, 6 }
  0x3f   : > { %1795 = vmatprep.subr.bf16.mxu0 %v4099_v0  ;;  %3544 = vmatprep.subr.bf16.mxu1 %v4099_v0  ;;  %v3650_v3 = vld [vmem:[%s5033_s1 + $0x28] sm:$0xff]   ;;  %v3651_v4 = vld [vmem:[%s5033_s1 + $0x20] sm:$0xff]   ;;  %v3652_v5 = vld [vmem:[%s5033_s1 + $0x18] sm:$0xff]   ;;  %p243_p3 = scmp.lt.s32.totalorder %s3171_s22, 127  ;;  %vm2982_vm0 = vcmask 519168  }
  0x40   : > { %1796 = vmatpush1.bf16.msra.mxu0 %v3648_v1  ;;  %3560 = vmatpush1.bf16.msra.mxu1 %v3648_v1  ;;  %v3666_v6 = vld [vmem:[%s4210_s10 + $0x4] ss:$24 sps:$4 sm:$0xff]   ;;  %v3653_v7 = vld [vmem:[%s5033_s1 + $0x10] sm:$0xff]   ;;  %v3654_v9 = vld [vmem:[%s5033_s1 + $0x8] sm:$0xff]  }
  0x41   : > { %1797 = vmatprep.subr.bf16.mxu0 %v4099_v0  ;;  %3545 = vmatprep.subr.bf16.mxu1 %v4099_v0  ;;  %v3669_v8 = vld [vmem:[%s4210_s10 + $0x304] ss:$24 sps:$4 sm:$0xff]   ;;  %v3657_v12 = vld [vmem:[%s5033_s1 + $0x70] sm:$0xff]   ;;  %v3658_v13 = vld [vmem:[%s5033_s1 + $0x68] sm:$0xff]   ;;  %s5091_s22 = smov (!%p243_p3, %s3171_s22), 127 }
  0x42   : > { %1827 = vmatprep.mubr.bf16.mxu0 %v3666_v6  ;;  %1955 = vmatprep.mubr.bf16.mxu1 %v3669_v8  ;;  %v3655_v10 = vld [vmem:[%s5033_s1] sm:$0xff]   ;;  %v3656_v11 = vld [vmem:[%s5033_s1 + $0x78] sm:$0xff]   ;;  %v3661_v16 = vld [vmem:[%s5033_s1 + $0x50] sm:$0xff]   ;;  %s3172_s15 = sshll.u32 %s5091_s22, 2 }
  0x43   : > { %v3659_v14 = vld [vmem:[%s5033_s1 + $0x60] sm:$0xff]   ;;  %v3660_v15 = vld [vmem:[%s5033_s1 + $0x58] sm:$0xff]   ;;  %v3662_v17 = vld [vmem:[%s5033_s1 + $0x48] sm:$0xff]   ;;  %s4736_s20 = scalar_lea.vmem %s5035_s3, %s3172_s15 }
  0x44   : > { %1798 = vmatpush1.bf16.msra.mxu0 %v3649_v2  ;;  %3561 = vmatpush1.bf16.msra.mxu1 %v3649_v2  ;;  %v3663_v18 = vld [vmem:[%s5033_s1 + $0x40] sm:$0xff]   ;;  %v3670_v21 = vld [vmem:[%s5033_s1 + $0xb8] sm:$0xff]   ;;  %v3672_v23 = vld [vmem:[%s4210_s10 + $0x34] ss:$24 sps:$4 sm:$0xff]  }
  0x45   : > { %1799 = vmatprep.subr.bf16.mxu0 %v4099_v0  ;;  %3546 = vmatprep.subr.bf16.mxu1 %v4099_v0  ;;  %v3664_v19 = vld [vmem:[%s4210_s10] ss:$24 sps:$4 sm:$0xff]   ;;  %v3674_v24 = vld [vmem:[%s4210_s10 + $0x334] ss:$24 sps:$4 sm:$0xff]   ;;  %v3676_v27 = vld [vmem:[%s4210_s10 + $0x30] ss:$24 sps:$4 sm:$0xff]  }
  0x46   : > { %v3667_v20 = vld [vmem:[%s4210_s10 + $0x300] ss:$24 sps:$4 sm:$0xff]   ;;  %v3678_v25 = vld [vmem:[%s5033_s1 + $0xb0] sm:$0xff]   ;;  %v3680_v29 = vld [vmem:[%s4210_s10 + $0x64] ss:$24 sps:$4 sm:$0xff]  }
  0x47   : > { %v3671_v22 = vld [vmem:[%s5033_s1 + $0x138] sm:$0xff]   ;;  %v3679_v26 = vld [vmem:[%s5033_s1 + $0x130] sm:$0xff]   ;;  %v3686_v31 = vld [vmem:[%s5033_s1 + $0xa8] sm:$0xff]  }
  0x48   : > { %1800 = vmatpush1.bf16.msra.mxu0 %v3650_v3  ;;  %3562 = vmatpush1.bf16.msra.mxu1 %v3650_v3  ;;  %v3677_v28 = vld [vmem:[%s4210_s10 + $0x330] ss:$24 sps:$4 sm:$0xff]   ;;  %v3682_v30 = vld [vmem:[%s4210_s10 + $0x364] ss:$24 sps:$4 sm:$0xff]   ;;  %v3684_v34 = vld [vmem:[%s4210_s10 + $0x60] ss:$24 sps:$4 sm:$0xff]  }
  0x49   : > { %1801 = vmatprep.subr.bf16.mxu0 %v4099_v0  ;;  %3547 = vmatprep.subr.bf16.mxu1 %v4099_v0  ;;  %v3687_v32 = vld [vmem:[%s5033_s1 + $0x128] sm:$0xff]   ;;  %v3694_v33 = vld [vmem:[%s5033_s1 + $0xa0] sm:$0xff]   ;;  %v3702_v39 = vld [vmem:[%s5033_s1 + $0x98] sm:$0xff]  }
  0x4a   : > { %v3695_v35 = vld [vmem:[%s5033_s1 + $0x120] sm:$0xff]   ;;  %v3688_v37 = vld [vmem:[%s4210_s10 + $0x94] ss:$24 sps:$4 sm:$0xff]   ;;  %v3703_v40 = vld [vmem:[%s5033_s1 + $0x118] sm:$0xff]  }
  0x4b   : > { %v3685_v36 = vld [vmem:[%s4210_s10 + $0x360] ss:$24 sps:$4 sm:$0xff]   ;;  %v3690_v38 = vld [vmem:[%s4210_s10 + $0x394] ss:$24 sps:$4 sm:$0xff]   ;;  %v3692_v41 = vld [vmem:[%s4210_s10 + $0x90] ss:$24 sps:$4 sm:$0xff]  }
  0x4c   : > { %1802 = vmatpush1.bf16.msra.mxu0 %v3651_v4  ;;  %3563 = vmatpush1.bf16.msra.mxu1 %v3651_v4  ;;  %v3693_v42 = vld [vmem:[%s4210_s10 + $0x390] ss:$24 sps:$4 sm:$0xff]   ;;  %v3696_v45 = vld [vmem:[%s4210_s10 + $0xc4] ss:$24 sps:$4 sm:$0xff]   ;;  %v3700_v49 = vld [vmem:[%s4210_s10 + $0xc0] ss:$24 sps:$4 sm:$0xff]  }
  0x4d   : > { %1803 = vmatprep.subr.bf16.mxu0 %v4099_v0  ;;  %3548 = vmatprep.subr.bf16.mxu1 %v4099_v0  ;;  %v3710_v43 = vld [vmem:[%s5033_s1 + $0x90] sm:$0xff]   ;;  %v3698_v46 = vld [vmem:[%s4210_s10 + $0x3c4] ss:$24 sps:$4 sm:$0xff]   ;;  %v3718_v47 = vld [vmem:[%s5033_s1 + $0x88] sm:$0xff]  }
  0x4e   : > { %v3711_v44 = vld [vmem:[%s5033_s1 + $0x110] sm:$0xff]   ;;  %v3719_v48 = vld [vmem:[%s5033_s1 + $0x108] sm:$0xff]   ;;  %v3726_v50 = vld [vmem:[%s5033_s1 + $0x80] sm:$0xff]  }
  0x4f   : > { %v3727_v51 = vld [vmem:[%s5033_s1 + $0x100] sm:$0xff]   ;;  %v3704_v53 = vld [vmem:[%s4210_s10 + $0xf4] ss:$24 sps:$4 sm:$0xff]   ;;  %v3734_v55 = vld [vmem:[%s5033_s1 + $0xf8] sm:$0xff]  }
  0x50   : > { %1804 = vmatpush1.bf16.msra.mxu0 %v3652_v5  ;;  %3564 = vmatpush1.bf16.msra.mxu1 %v3652_v5  ;;  %v3701_v52 = vld [vmem:[%s4210_s10 + $0x3c0] ss:$24 sps:$4 sm:$0xff]   ;;  %v3706_v54 = vld [vmem:[%s4210_s10 + $0x3f4] ss:$24 sps:$4 sm:$0xff]   ;;  %v3708_v59 = vld [vmem:[%s4210_s10 + $0xf0] ss:$24 sps:$4 sm:$0xff]  }
  0x51   : > { %1805 = vmatprep.subr.bf16.mxu0 %v4099_v0  ;;  %3549 = vmatprep.subr.bf16.mxu1 %v4099_v0  ;;  %v3735_v56 = vld [vmem:[%s5033_s1 + $0x178] sm:$0xff]   ;;  %v3742_v57 = vld [vmem:[%s5033_s1 + $0xf0] sm:$0xff]   ;;  %v3750_v63 = vld [vmem:[%s5033_s1 + $0xe8] sm:$0xff]  }
  0x52   : > { %v3743_v58 = vld [vmem:[%s5033_s1 + $0x170] sm:$0xff]   ;;  %v3712_v61 = vld [vmem:[%s4210_s10 + $0x124] ss:$24 sps:$4 sm:$0xff]   ;;  %v3751_v1 = vld [vmem:[%s5033_s1 + $0x168] sm:$0xff]  }
  0x53   : > { %v3709_v60 = vld [vmem:[%s4210_s10 + $0x3f0] ss:$24 sps:$4 sm:$0xff]   ;;  %v3714_v62 = vld [vmem:[%s4210_s10 + $0x424] ss:$24 sps:$4 sm:$0xff]   ;;  %v3716_v3 = vld [vmem:[%s4210_s10 + $0x120] ss:$24 sps:$4 sm:$0xff]  }
  0x54   : > { %1806 = vmatpush1.bf16.msra.mxu0 %v3653_v7  ;;  %3565 = vmatpush1.bf16.msra.mxu1 %v3653_v7  ;;  %v3758_v2 = vld [vmem:[%s5033_s1 + $0xe0] sm:$0xff]   ;;  %v3720_v6 = vld [vmem:[%s4210_s10 + $0x154] ss:$24 sps:$4 sm:$0xff]   ;;  %v3766_v8 = vld [vmem:[%s5033_s1 + $0xd8] sm:$0xff]  }
  0x55   : > { %1807 = vmatprep.subr.bf16.mxu0 %v4099_v0  ;;  %3550 = vmatprep.subr.bf16.mxu1 %v4099_v0  ;;  %v3717_v4 = vld [vmem:[%s4210_s10 + $0x420] ss:$24 sps:$4 sm:$0xff]   ;;  %v3722_v7 = vld [vmem:[%s4210_s10 + $0x454] ss:$24 sps:$4 sm:$0xff]  }
  0x56   : > { %v3759_v5 = vld [vmem:[%s5033_s1 + $0x160] sm:$0xff]  }
  0x58   : > { %1808 = vmatpush1.bf16.msra.mxu0 %v3654_v9  ;;  %3566 = vmatpush1.bf16.msra.mxu1 %v3654_v9  ;;  %v3767_v9 = vld [vmem:[%s5033_s1 + $0x158] sm:$0xff]  }
  0x59   : > { %1809 = vmatprep.subr.bf16.mxu0 %v4099_v0  ;;  %3551 = vmatprep.subr.bf16.mxu1 %v4099_v0 }
  0x5c   : > { %1810 = vmatpush1.bf16.msra.mxu0 %v3655_v10  ;;  %3567 = vmatpush1.bf16.msra.mxu1 %v3655_v10  ;;  %v3774_v10 = vld [vmem:[%s5033_s1 + $0xd0] sm:$0xff]  }
  0x5d   : > { %1811 = vmatprep.subr.bf16.mxu0 %v4099_v0  ;;  %3552 = vmatprep.subr.bf16.mxu1 %v4099_v0 }
  0x60   : > { %1812 = vmatpush2.bf16.msra.mxu0 %v3656_v11  ;;  %3568 = vmatpush2.bf16.msra.mxu1 %v3656_v11  ;;  %v3775_v11 = vld [vmem:[%s5033_s1 + $0x150] sm:$0xff]  }
  0x61   : > { %1813 = vmatprep.subr.bf16.mxu0 %v4099_v0  ;;  %3553 = vmatprep.subr.bf16.mxu1 %v4099_v0 }
  0x64   : > { %1814 = vmatpush2.bf16.msra.mxu0 %v3657_v12  ;;  %3569 = vmatpush2.bf16.msra.mxu1 %v3657_v12  ;;  %v3724_v12 = vld [vmem:[%s4210_s10 + $0x150] ss:$24 sps:$4 sm:$0xff]  }
  0x65   : > { %1815 = vmatprep.subr.bf16.mxu0 %v4099_v0  ;;  %3554 = vmatprep.subr.bf16.mxu1 %v4099_v0 }
  0x68   : > { %1816 = vmatpush2.bf16.msra.mxu0 %v3658_v13  ;;  %3570 = vmatpush2.bf16.msra.mxu1 %v3658_v13  ;;  %v3725_v13 = vld [vmem:[%s4210_s10 + $0x450] ss:$24 sps:$4 sm:$0xff]  }
  0x69   : > { %1817 = vmatprep.subr.bf16.mxu0 %v4099_v0  ;;  %3555 = vmatprep.subr.bf16.mxu1 %v4099_v0 }
  0x6c   : > { %1818 = vmatpush2.bf16.msra.mxu0 %v3659_v14  ;;  %3571 = vmatpush2.bf16.msra.mxu1 %v3659_v14  ;;  %v3728_v14 = vld [vmem:[%s4210_s10 + $0x184] ss:$24 sps:$4 sm:$0xff]  }
  0x6d   : > { %1819 = vmatprep.subr.bf16.mxu0 %v4099_v0  ;;  %3556 = vmatprep.subr.bf16.mxu1 %v4099_v0 }
  0x70   : > { %1820 = vmatpush2.bf16.msra.mxu0 %v3660_v15  ;;  %3572 = vmatpush2.bf16.msra.mxu1 %v3660_v15  ;;  %v3730_v15 = vld [vmem:[%s4210_s10 + $0x484] ss:$24 sps:$4 sm:$0xff]  }
  0x71   : > { %1821 = vmatprep.subr.bf16.mxu0 %v4099_v0  ;;  %3557 = vmatprep.subr.bf16.mxu1 %v4099_v0 }
  0x74   : > { %1822 = vmatpush2.bf16.msra.mxu0 %v3661_v16  ;;  %3573 = vmatpush2.bf16.msra.mxu1 %v3661_v16  ;;  %v3782_v16 = vld [vmem:[%s5033_s1 + $0xc8] sm:$0xff]  }
  0x75   : > { %1823 = vmatprep.subr.bf16.mxu0 %v4099_v0  ;;  %3558 = vmatprep.subr.bf16.mxu1 %v4099_v0 }
  0x78   : > { %1824 = vmatpush2.bf16.msra.mxu0 %v3662_v17  ;;  %3574 = vmatpush2.bf16.msra.mxu1 %v3662_v17  ;;  %v3783_v17 = vld [vmem:[%s5033_s1 + $0x148] sm:$0xff]  }
  0x79   : > { %1825 = vmatprep.subr.bf16.mxu0 %v4099_v0  ;;  %3559 = vmatprep.subr.bf16.mxu1 %v4099_v0 }
  0x7c   : > { %1826 = vmatpush2.bf16.msra.mxu0 %v3663_v18  ;;  %3575 = vmatpush2.bf16.msra.mxu1 %v3663_v18  ;;  %v3790_v18 = vld [vmem:[%s5033_s1 + $0xc0] sm:$0xff]  }
  0x7d   : > { %2084 = vmatprep.subr.bf16.mxu1 %v4099_v0  ;;  %2373 = vmatprep.subr.bf16.mxu0 %v4099_v0 }
  0x7f   : > { %1828 = vmatmul.mubr.bf16.vlgmr.msra.gmra.mxu0 %v3664_v19  ;;  %1956 = vmatmul.mubr.bf16.vlgmr.msra.gmra.mxu1 %v3667_v20  ;;  %v3791_v19 = vld [vmem:[%s5033_s1 + $0x140] sm:$0xff]  }
  0x80   : > { %2085 = vmatpush1.bf16.msra.mxu1 %v3670_v21  ;;  %2374 = vmatpush1.bf16.msra.mxu0 %v3671_v22  ;;  %v3732_v20 = vld [vmem:[%s4210_s10 + $0x180] ss:$24 sps:$4 sm:$0xff]   ;;  %v3736_v22 = vld [vmem:[%s4210_s10 + $0x1b4] ss:$24 sps:$4 sm:$0xff]  }
  0x81   : > { %1835 = vmatprep.mubr.bf16.mxu0 %v3672_v23  ;;  %1963 = vmatprep.mubr.bf16.mxu1 %v3674_v24  ;;  %v3733_v21 = vld [vmem:[%s4210_s10 + $0x480] ss:$24 sps:$4 sm:$0xff]   ;;  %v3738_v23 = vld [vmem:[%s4210_s10 + $0x4b4] ss:$24 sps:$4 sm:$0xff]   ;;  %v3740_v24 = vld [vmem:[%s4210_s10 + $0x1b0] ss:$24 sps:$4 sm:$0xff]  }
  0x82   : > { %2086 = vmatprep.subr.bf16.mxu1 %v4099_v0  ;;  %2375 = vmatprep.subr.bf16.mxu0 %v4099_v0 }
  0x84   : > { %2087 = vmatpush1.bf16.msra.mxu1 %v3678_v25  ;;  %2376 = vmatpush1.bf16.msra.mxu0 %v3679_v26  ;;  %v3741_v25 = vld [vmem:[%s4210_s10 + $0x4b0] ss:$24 sps:$4 sm:$0xff]   ;;  %v3744_v26 = vld [vmem:[%s4210_s10 + $0x1e4] ss:$24 sps:$4 sm:$0xff]  }
  0x85   : > { %2088 = vmatprep.subr.bf16.mxu1 %v4099_v0  ;;  %2377 = vmatprep.subr.bf16.mxu0 %v4099_v0 }
  0x87   : > { %1836 = vmatmul.mubr.bf16.gmra.mxu0 %v3676_v27  ;;  %1964 = vmatmul.mubr.bf16.gmra.mxu1 %v3677_v28  ;;  %v3746_v27 = vld [vmem:[%s4210_s10 + $0x4e4] ss:$24 sps:$4 sm:$0xff]   ;;  %v3749_v28 = vld [vmem:[%s4210_s10 + $0x4e0] ss:$24 sps:$4 sm:$0xff]  }
  0x88   : > { %1843 = vmatprep.mubr.bf16.mxu0 %v3680_v29  ;;  %1971 = vmatprep.mubr.bf16.mxu1 %v3682_v30  ;;  %v3752_v29 = vld [vmem:[%s4210_s10 + $0x214] ss:$24 sps:$4 sm:$0xff]  }
  0x89   : > { %2089 = vmatpush1.bf16.msra.mxu1 %v3686_v31  ;;  %2378 = vmatpush1.bf16.msra.mxu0 %v3687_v32  ;;  %v3754_v30 = vld [vmem:[%s4210_s10 + $0x514] ss:$24 sps:$4 sm:$0xff]   ;;  %v3756_v31 = vld [vmem:[%s4210_s10 + $0x210] ss:$24 sps:$4 sm:$0xff]  }
  0x8a   : > { %2090 = vmatprep.subr.bf16.mxu1 %v4099_v0  ;;  %2379 = vmatprep.subr.bf16.mxu0 %v4099_v0  ;;  %v3757_v32 = vld [vmem:[%s4210_s10 + $0x510] ss:$24 sps:$4 sm:$0xff]  }
  0x8d   : > { %2091 = vmatpush1.bf16.msra.mxu1 %v3694_v33  ;;  %2380 = vmatpush1.bf16.msra.mxu0 %v3695_v35  ;;  %v3760_v33 = vld [vmem:[%s4210_s10 + $0x244] ss:$24 sps:$4 sm:$0xff]   ;;  %v3764_v35 = vld [vmem:[%s4210_s10 + $0x240] ss:$24 sps:$4 sm:$0xff]  }
  0x8e   : > { %2092 = vmatprep.subr.bf16.mxu1 %v4099_v0  ;;  %2381 = vmatprep.subr.bf16.mxu0 %v4099_v0 }
  0x8f   : > { %1844 = vmatmul.mubr.bf16.gmra.mxu0 %v3684_v34  ;;  %1972 = vmatmul.mubr.bf16.gmra.mxu1 %v3685_v36  ;;  %v3762_v34 = vld [vmem:[%s4210_s10 + $0x544] ss:$24 sps:$4 sm:$0xff]   ;;  %v3765_v36 = vld [vmem:[%s4210_s10 + $0x540] ss:$24 sps:$4 sm:$0xff]  }
  0x90   : > { %1851 = vmatprep.mubr.bf16.mxu0 %v3688_v37  ;;  %1979 = vmatprep.mubr.bf16.mxu1 %v3690_v38  ;;  %v3768_v37 = vld [vmem:[%s4210_s10 + $0x274] ss:$24 sps:$4 sm:$0xff]  }
  0x91   : > { %2093 = vmatpush1.bf16.msra.mxu1 %v3702_v39  ;;  %2382 = vmatpush1.bf16.msra.mxu0 %v3703_v40  ;;  %v3770_v38 = vld [vmem:[%s4210_s10 + $0x574] ss:$24 sps:$4 sm:$0xff]   ;;  %v3772_v39 = vld [vmem:[%s4210_s10 + $0x270] ss:$24 sps:$4 sm:$0xff]  }
  0x92   : > { %2094 = vmatprep.subr.bf16.mxu1 %v4099_v0  ;;  %2383 = vmatprep.subr.bf16.mxu0 %v4099_v0  ;;  %v3773_v40 = vld [vmem:[%s4210_s10 + $0x570] ss:$24 sps:$4 sm:$0xff]  }
  0x95   : > { %2095 = vmatpush1.bf16.msra.mxu1 %v3710_v43  ;;  %2384 = vmatpush1.bf16.msra.mxu0 %v3711_v44  ;;  %v3780_v43 = vld [vmem:[%s4210_s10 + $0x2a0] ss:$24 sps:$4 sm:$0xff]  }
  0x96   : > { %2096 = vmatprep.subr.bf16.mxu1 %v4099_v0  ;;  %2385 = vmatprep.subr.bf16.mxu0 %v4099_v0  ;;  %v3781_v44 = vld [vmem:[%s4210_s10 + $0x5a0] ss:$24 sps:$4 sm:$0xff]  }
  0x97   : > { %1852 = vmatmul.mubr.bf16.gmra.mxu0 %v3692_v41  ;;  %1980 = vmatmul.mubr.bf16.gmra.mxu1 %v3693_v42  ;;  %v3776_v41 = vld [vmem:[%s4210_s10 + $0x2a4] ss:$24 sps:$4 sm:$0xff]  }
  0x98   : > { %1859 = vmatprep.mubr.bf16.mxu0 %v3696_v45  ;;  %1987 = vmatprep.mubr.bf16.mxu1 %v3698_v46  ;;  %v3778_v42 = vld [vmem:[%s4210_s10 + $0x5a4] ss:$24 sps:$4 sm:$0xff]   ;;  %v3784_v45 = vld [vmem:[%s4210_s10 + $0x2d4] ss:$24 sps:$4 sm:$0xff]  }
  0x99   : > { %2097 = vmatpush1.bf16.msra.mxu1 %v3718_v47  ;;  %2386 = vmatpush1.bf16.msra.mxu0 %v3719_v48  ;;  %v3786_v46 = vld [vmem:[%s4210_s10 + $0x5d4] ss:$24 sps:$4 sm:$0xff]   ;;  %v3788_v47 = vld [vmem:[%s4210_s10 + $0x2d0] ss:$24 sps:$4 sm:$0xff]  }
  0x9a   : > { %2098 = vmatprep.subr.bf16.mxu1 %v4099_v0  ;;  %2387 = vmatprep.subr.bf16.mxu0 %v4099_v0  ;;  %v3789_v48 = vld [vmem:[%s4210_s10 + $0x5d0] ss:$24 sps:$4 sm:$0xff]  }
  0x9d   : > { %2099 = vmatpush1.bf16.msra.mxu1 %v3726_v50  ;;  %2388 = vmatpush1.bf16.msra.mxu0 %v3727_v51  ;;  %v3797_v50 = vld [vmem:[%s4210_s10 + $0x14] ss:$24 sps:$4 sm:$0xff]   ;;  %v3792_v51 = vld [vmem:[%s4210_s10 + $0x8] ss:$24 sps:$4 sm:$0xff]  }
  0x9e   : > { %2100 = vmatprep.subr.bf16.mxu1 %v4099_v0  ;;  %2389 = vmatprep.subr.bf16.mxu0 %v4099_v0 }
  0x9f   : > { %1860 = vmatmul.mubr.bf16.gmra.mxu0 %v3700_v49  ;;  %1988 = vmatmul.mubr.bf16.gmra.mxu1 %v3701_v52  ;;  %v3794_v49 = vld [vmem:[%s4210_s10 + $0xc] ss:$24 sps:$4 sm:$0xff]   ;;  %v3795_v52 = vld [vmem:[%s4210_s10 + $0x10] ss:$24 sps:$4 sm:$0xff]  }
  0xa0   : > { %1867 = vmatprep.mubr.bf16.mxu0 %v3704_v53  ;;  %1995 = vmatprep.mubr.bf16.mxu1 %v3706_v54  ;;  %v3798_v53 = vld [vmem:[%s4210_s10 + $0x3c] ss:$24 sps:$4 sm:$0xff]  }
  0xa1   : > { %2101 = vmatpush2.bf16.msra.mxu1 %v3734_v55  ;;  %2390 = vmatpush2.bf16.msra.mxu0 %v3735_v56  ;;  %v3800_v54 = vld [vmem:[%s4210_s10 + $0x44] ss:$24 sps:$4 sm:$0xff]   ;;  %v3802_v55 = vld [vmem:[%s4210_s10 + $0x38] ss:$24 sps:$4 sm:$0xff]  }
  0xa2   : > { %2102 = vmatprep.subr.bf16.mxu1 %v4099_v0  ;;  %2391 = vmatprep.subr.bf16.mxu0 %v4099_v0  ;;  %v3803_v56 = vld [vmem:[%s4210_s10 + $0x40] ss:$24 sps:$4 sm:$0xff]  }
  0xa5   : > { %2103 = vmatpush2.bf16.msra.mxu1 %v3742_v57  ;;  %2392 = vmatpush2.bf16.msra.mxu0 %v3743_v58  ;;  %v3804_v57 = vld [vmem:[%s4210_s10 + $0x6c] ss:$24 sps:$4 sm:$0xff]  }
  0xa6   : > { %2104 = vmatprep.subr.bf16.mxu1 %v4099_v0  ;;  %2393 = vmatprep.subr.bf16.mxu0 %v4099_v0  ;;  %v3806_v58 = vld [vmem:[%s4210_s10 + $0x74] ss:$24 sps:$4 sm:$0xff]  }
  0xa7   : > { %1868 = vmatmul.mubr.bf16.gmra.mxu0 %v3708_v59  ;;  %1996 = vmatmul.mubr.bf16.gmra.mxu1 %v3709_v60  ;;  %v3808_v59 = vld [vmem:[%s4210_s10 + $0x68] ss:$24 sps:$4 sm:$0xff]  }
  0xa8   : > { %1875 = vmatprep.mubr.bf16.mxu0 %v3712_v61  ;;  %2003 = vmatprep.mubr.bf16.mxu1 %v3714_v62  ;;  %v3809_v60 = vld [vmem:[%s4210_s10 + $0x70] ss:$24 sps:$4 sm:$0xff]   ;;  %v3810_v61 = vld [vmem:[%s4210_s10 + $0x9c] ss:$24 sps:$4 sm:$0xff]  }
  0xa9   : > { %2105 = vmatpush2.bf16.msra.mxu1 %v3750_v63  ;;  %2394 = vmatpush2.bf16.msra.mxu0 %v3751_v1  ;;  %v3812_v62 = vld [vmem:[%s4210_s10 + $0xa4] ss:$24 sps:$4 sm:$0xff]   ;;  %v3814_v63 = vld [vmem:[%s4210_s10 + $0x98] ss:$24 sps:$4 sm:$0xff]  }
  0xaa   : > { %2106 = vmatprep.subr.bf16.mxu1 %v4099_v0  ;;  %2395 = vmatprep.subr.bf16.mxu0 %v4099_v0  ;;  %v3815_v1 = vld [vmem:[%s4210_s10 + $0xa0] ss:$24 sps:$4 sm:$0xff]  }
  0xad   : > { %2107 = vmatpush2.bf16.msra.mxu1 %v3758_v2  ;;  %2396 = vmatpush2.bf16.msra.mxu0 %v3759_v5  ;;  %v3816_v2 = vld [vmem:[%s4210_s10 + $0xcc] ss:$24 sps:$4 sm:$0xff]   ;;  %v3821_v5 = vld [vmem:[%s4210_s10 + $0xd0] ss:$24 sps:$4 sm:$0xff]  }
  0xae   : > { %2108 = vmatprep.subr.bf16.mxu1 %v4099_v0  ;;  %2397 = vmatprep.subr.bf16.mxu0 %v4099_v0 }
  0xaf   : > { %1876 = vmatmul.mubr.bf16.gmra.mxu0 %v3716_v3  ;;  %2004 = vmatmul.mubr.bf16.gmra.mxu1 %v3717_v4  ;;  %v3818_v3 = vld [vmem:[%s4210_s10 + $0xd4] ss:$24 sps:$4 sm:$0xff]   ;;  %v3820_v4 = vld [vmem:[%s4210_s10 + $0xc8] ss:$24 sps:$4 sm:$0xff]  }
  0xb0   : > { %1883 = vmatprep.mubr.bf16.mxu0 %v3720_v6  ;;  %2011 = vmatprep.mubr.bf16.mxu1 %v3722_v7  ;;  %v3822_v6 = vld [vmem:[%s4210_s10 + $0xfc] ss:$24 sps:$4 sm:$0xff]  }
  0xb1   : > { %2109 = vmatpush2.bf16.msra.mxu1 %v3766_v8  ;;  %2398 = vmatpush2.bf16.msra.mxu0 %v3767_v9  ;;  %v3824_v7 = vld [vmem:[%s4210_s10 + $0x104] ss:$24 sps:$4 sm:$0xff]   ;;  %v3826_v8 = vld [vmem:[%s4210_s10 + $0xf8] ss:$24 sps:$4 sm:$0xff]  }
  0xb2   : > { %2110 = vmatprep.subr.bf16.mxu1 %v4099_v0  ;;  %2399 = vmatprep.subr.bf16.mxu0 %v4099_v0  ;;  %v3827_v9 = vld [vmem:[%s4210_s10 + $0x100] ss:$24 sps:$4 sm:$0xff]  }
  0xb5   : > { %2111 = vmatpush2.bf16.msra.mxu1 %v3774_v10  ;;  %2400 = vmatpush2.bf16.msra.mxu0 %v3775_v11  ;;  %v3828_v10 = vld [vmem:[%s4210_s10 + $0x12c] ss:$24 sps:$4 sm:$0xff]  }
  0xb6   : > { %2112 = vmatprep.subr.bf16.mxu1 %v4099_v0  ;;  %2401 = vmatprep.subr.bf16.mxu0 %v4099_v0  ;;  %v3830_v11 = vld [vmem:[%s4210_s10 + $0x134] ss:$24 sps:$4 sm:$0xff]  }
  0xb7   : > { %1884 = vmatmul.mubr.bf16.gmra.mxu0 %v3724_v12  ;;  %2012 = vmatmul.mubr.bf16.gmra.mxu1 %v3725_v13  ;;  %v3832_v12 = vld [vmem:[%s4210_s10 + $0x128] ss:$24 sps:$4 sm:$0xff]  }
  0xb8   : > { %1891 = vmatprep.mubr.bf16.mxu0 %v3728_v14  ;;  %2019 = vmatprep.mubr.bf16.mxu1 %v3730_v15  ;;  %v3833_v13 = vld [vmem:[%s4210_s10 + $0x130] ss:$24 sps:$4 sm:$0xff]   ;;  %v3834_v14 = vld [vmem:[%s4210_s10 + $0x15c] ss:$24 sps:$4 sm:$0xff]  }
  0xb9   : > { %2113 = vmatpush2.bf16.msra.mxu1 %v3782_v16  ;;  %2402 = vmatpush2.bf16.msra.mxu0 %v3783_v17  ;;  %v3836_v15 = vld [vmem:[%s4210_s10 + $0x164] ss:$24 sps:$4 sm:$0xff]   ;;  %v3838_v16 = vld [vmem:[%s4210_s10 + $0x158] ss:$24 sps:$4 sm:$0xff]  }
  0xba   : > { %2114 = vmatprep.subr.bf16.mxu1 %v4099_v0  ;;  %2403 = vmatprep.subr.bf16.mxu0 %v4099_v0  ;;  %v3748_v0 = vld [vmem:[%s4210_s10 + $0x1e0] ss:$24 sps:$4 sm:$0xff]  }
  0xbb   : > { %v3839_v17 = vld [vmem:[%s4210_s10 + $0x160] ss:$24 sps:$4 sm:$0xff]  }
  0xbd   : > { %2115 = vmatpush2.bf16.msra.mxu1 %v3790_v18  ;;  %2404 = vmatpush2.bf16.msra.mxu0 %v3791_v19  ;;  %v3840_v18 = vld [vmem:[%s4210_s10 + $0x18c] ss:$24 sps:$4 sm:$0xff]  }
  0xbe   : > { %v3842_v19 = vld [vmem:[%s4210_s10 + $0x194] ss:$24 sps:$4 sm:$0xff]  }
  0xbf   : > { %1892 = vmatmul.mubr.bf16.gmra.mxu0 %v3732_v20  ;;  %2020 = vmatmul.mubr.bf16.gmra.mxu1 %v3733_v21  ;;  %v3844_v20 = vld [vmem:[%s4210_s10 + $0x188] ss:$24 sps:$4 sm:$0xff]  }
  0xc0   : > { %1899 = vmatprep.mubr.bf16.mxu0 %v3736_v22  ;;  %2027 = vmatprep.mubr.bf16.mxu1 %v3738_v23  ;;  %v3845_v21 = vld [vmem:[%s4210_s10 + $0x190] ss:$24 sps:$4 sm:$0xff]   ;;  %v3846_v22 = vld [vmem:[%s4210_s10 + $0x1bc] ss:$24 sps:$4 sm:$0xff]  }
  0xc1   : > { %v3848_v23 = vld [vmem:[%s4210_s10 + $0x1c4] ss:$24 sps:$4 sm:$0xff]  }
  0xc7   : > { %1900 = vmatmul.mubr.bf16.gmra.mxu0 %v3740_v24  ;;  %2028 = vmatmul.mubr.bf16.gmra.mxu1 %v3741_v25 }
  0xc8   : > { %1907 = vmatprep.mubr.bf16.mxu0 %v3744_v26  ;;  %2035 = vmatprep.mubr.bf16.mxu1 %v3746_v27 }
  0xcf   : > { %1908 = vmatmul.mubr.bf16.gmra.mxu0 %v3748_v0  ;;  %2036 = vmatmul.mubr.bf16.gmra.mxu1 %v3749_v28 }
  0xd0   : > { %1915 = vmatprep.mubr.bf16.mxu0 %v3752_v29  ;;  %2043 = vmatprep.mubr.bf16.mxu1 %v3754_v30  ;;  %v3850_v29 = vld [vmem:[%s4210_s10 + $0x1b8] ss:$24 sps:$4 sm:$0xff]  }
  0xd1   : > { %v3851_v30 = vld [vmem:[%s4210_s10 + $0x1c0] ss:$24 sps:$4 sm:$0xff]  }
  0xd7   : > { %1916 = vmatmul.mubr.bf16.gmra.mxu0 %v3756_v31  ;;  %2044 = vmatmul.mubr.bf16.gmra.mxu1 %v3757_v32  ;;  %v3852_v31 = vld [vmem:[%s4210_s10 + $0x1ec] ss:$24 sps:$4 sm:$0xff]  }
  0xd8   : > { %1923 = vmatprep.mubr.bf16.mxu0 %v3760_v33  ;;  %2051 = vmatprep.mubr.bf16.mxu1 %v3762_v34  ;;  %v3854_v32 = vld [vmem:[%s4210_s10 + $0x1f4] ss:$24 sps:$4 sm:$0xff]  }
  0xdf   : > { %1924 = vmatmul.mubr.bf16.gmra.mxu0 %v3764_v35  ;;  %2052 = vmatmul.mubr.bf16.gmra.mxu1 %v3765_v36 }
  0xe0   : > { %1931 = vmatprep.mubr.bf16.mxu0 %v3768_v37  ;;  %2059 = vmatprep.mubr.bf16.mxu1 %v3770_v38 }
  0xe7   : > { %1932 = vmatmul.mubr.bf16.gmra.mxu0 %v3772_v39  ;;  %2060 = vmatmul.mubr.bf16.gmra.mxu1 %v3773_v40 }
  0xe8   : > { %1939 = vmatprep.mubr.bf16.mxu0 %v3776_v41  ;;  %2067 = vmatprep.mubr.bf16.mxu1 %v3778_v42  ;;  %v3856_v41 = vld [vmem:[%s4210_s10 + $0x1e8] ss:$24 sps:$4 sm:$0xff]  }
  0xe9   : > { %v3857_v42 = vld [vmem:[%s4210_s10 + $0x1f0] ss:$24 sps:$4 sm:$0xff]  }
  0xef   : > { %1940 = vmatmul.mubr.bf16.gmra.mxu0 %v3780_v43  ;;  %2068 = vmatmul.mubr.bf16.gmra.mxu1 %v3781_v44  ;;  %v3858_v43 = vld [vmem:[%s4210_s10 + $0x21c] ss:$24 sps:$4 sm:$0xff]  }
  0xf0   : > { %1947 = vmatprep.mubr.bf16.mxu0 %v3784_v45  ;;  %2075 = vmatprep.mubr.bf16.mxu1 %v3786_v46  ;;  %v3860_v44 = vld [vmem:[%s4210_s10 + $0x224] ss:$24 sps:$4 sm:$0xff]  }
  0xf7   : > { %1948 = vmatmul.mubr.bf16.gmra.mxu0 %v3788_v47  ;;  %2076 = vmatmul.mubr.bf16.gmra.mxu1 %v3789_v48 }
  0xf8   : > { %2116 = vmatprep.mubr.bf16.mxu1 %v3794_v49  ;;  %2405 = vmatprep.mubr.bf16.mxu0 %v3797_v50 }
  0xff   : > { %2117 = vmatmul.mubr.bf16.vlgmr.msra.gmra.mxu1 %v3792_v51  ;;  %2406 = vmatmul.mubr.bf16.vlgmr.msra.gmra.mxu0 %v3795_v52 }
 0x100   : > { %2124 = vmatprep.mubr.bf16.mxu1 %v3798_v53  ;;  %2413 = vmatprep.mubr.bf16.mxu0 %v3800_v54  ;;  %v3862_v53 = vld [vmem:[%s4210_s10 + $0x218] ss:$24 sps:$4 sm:$0xff]  }
 0x101   : > { %v3863_v54 = vld [vmem:[%s4210_s10 + $0x220] ss:$24 sps:$4 sm:$0xff]  }
 0x107   : > { %2125 = vmatmul.mubr.bf16.gmra.mxu1 %v3802_v55  ;;  %2414 = vmatmul.mubr.bf16.gmra.mxu0 %v3803_v56  ;;  %v3866_v55 = vld [vmem:[%s4210_s10 + $0x24c] ss:$24 sps:$4 sm:$0xff]  }
 0x108   : > { %2132 = vmatprep.mubr.bf16.mxu1 %v3804_v57  ;;  %2421 = vmatprep.mubr.bf16.mxu0 %v3806_v58  ;;  %v3869_v56 = vld [vmem:[%s4210_s10 + $0x254] ss:$24 sps:$4 sm:$0xff]  }
 0x10f   : > { %2133 = vmatmul.mubr.bf16.gmra.mxu1 %v3808_v59  ;;  %2422 = vmatmul.mubr.bf16.gmra.mxu0 %v3809_v60 }
 0x110   : > { %2140 = vmatprep.mubr.bf16.mxu1 %v3810_v61  ;;  %2429 = vmatprep.mubr.bf16.mxu0 %v3812_v62 }
 0x117   : > { %2141 = vmatmul.mubr.bf16.gmra.mxu1 %v3814_v63  ;;  %2430 = vmatmul.mubr.bf16.gmra.mxu0 %v3815_v1 }
 0x118   : > { %2148 = vmatprep.mubr.bf16.mxu1 %v3816_v2  ;;  %2437 = vmatprep.mubr.bf16.mxu0 %v3818_v3  ;;  %v3864_v2 = vld [vmem:[%s4210_s10 + $0x248] ss:$24 sps:$4 sm:$0xff]  }
 0x119   : > { %v3867_v3 = vld [vmem:[%s4210_s10 + $0x250] ss:$24 sps:$4 sm:$0xff]  }
 0x11f   : > { %2149 = vmatmul.mubr.bf16.gmra.mxu1 %v3820_v4  ;;  %2438 = vmatmul.mubr.bf16.gmra.mxu0 %v3821_v5  ;;  %v3872_v4 = vld [vmem:[%s4210_s10 + $0x27c] ss:$24 sps:$4 sm:$0xff]  }
 0x120   : > { %2156 = vmatprep.mubr.bf16.mxu1 %v3822_v6  ;;  %2445 = vmatprep.mubr.bf16.mxu0 %v3824_v7  ;;  %v3875_v5 = vld [vmem:[%s4210_s10 + $0x284] ss:$24 sps:$4 sm:$0xff]  }
 0x127   : > { %2157 = vmatmul.mubr.bf16.gmra.mxu1 %v3826_v8  ;;  %2446 = vmatmul.mubr.bf16.gmra.mxu0 %v3827_v9 }
 0x128   : > { %2164 = vmatprep.mubr.bf16.mxu1 %v3828_v10  ;;  %2453 = vmatprep.mubr.bf16.mxu0 %v3830_v11 }
 0x12f   : > { %2165 = vmatmul.mubr.bf16.gmra.mxu1 %v3832_v12  ;;  %2454 = vmatmul.mubr.bf16.gmra.mxu0 %v3833_v13 }
 0x130   : > { %2172 = vmatprep.mubr.bf16.mxu1 %v3834_v14  ;;  %2461 = vmatprep.mubr.bf16.mxu0 %v3836_v15  ;;  %v3870_v14 = vld [vmem:[%s4210_s10 + $0x278] ss:$24 sps:$4 sm:$0xff]  }
 0x131   : > { %v3873_v15 = vld [vmem:[%s4210_s10 + $0x280] ss:$24 sps:$4 sm:$0xff]  }
 0x137   : > { %2173 = vmatmul.mubr.bf16.gmra.mxu1 %v3838_v16  ;;  %2462 = vmatmul.mubr.bf16.gmra.mxu0 %v3839_v17  ;;  %v3878_v16 = vld [vmem:[%s4210_s10 + $0x2ac] ss:$24 sps:$4 sm:$0xff]  }
 0x138   : > { %2180 = vmatprep.mubr.bf16.mxu1 %v3840_v18  ;;  %2469 = vmatprep.mubr.bf16.mxu0 %v3842_v19  ;;  %v3881_v17 = vld [vmem:[%s4210_s10 + $0x2b4] ss:$24 sps:$4 sm:$0xff]  }
 0x13f   : > { %v4530_v24 = vpop.f32.mrf.mxu0  ;;  %v4532_v25 = vpop.f32.mrf.mxu1  ;;  %2181 = vmatmul.mubr.bf16.gmra.mxu1 %v3844_v20  ;;  %2470 = vmatmul.mubr.bf16.gmra.mxu0 %v3845_v21 }
 0x140   : > { %2188 = vmatprep.mubr.bf16.mxu1 %v3846_v22  ;;  %2477 = vmatprep.mubr.bf16.mxu0 %v3848_v23 }
 0x141   : > { %v1831_v26 = vpop.f32.mrf.mxu0  ;;  %v1959_v27 = vpop.f32.mrf.mxu1 }
 0x143   : > { %v4534_v0 = vpop.f32.mrf.mxu0  ;;  %v4536_v28 = vpop.f32.mrf.mxu1 }
 0x145   : > { %v1834_v33 = vpop.f32.mrf.mxu0  ;;  %v1962_v34 = vpop.f32.mrf.mxu1 }
 0x147   : > { %v4542_v35 = vpop.f32.mrf.mxu0  ;;  %v4544_v36 = vpop.f32.mrf.mxu1  ;;  %2189 = vmatmul.mubr.bf16.gmra.mxu1 %v3850_v29  ;;  %2478 = vmatmul.mubr.bf16.gmra.mxu0 %v3851_v30  ;;  %v3876_v29 = vld [vmem:[%s4210_s10 + $0x2a8] ss:$24 sps:$4 sm:$0xff]  }
 0x148   : > { %2196 = vmatprep.mubr.bf16.mxu1 %v3852_v31  ;;  %2485 = vmatprep.mubr.bf16.mxu0 %v3854_v32  ;;  %v3879_v30 = vld [vmem:[%s4210_s10 + $0x2b0] ss:$24 sps:$4 sm:$0xff]   ;;  %v3884_v31 = vld [vmem:[%s4210_s10 + $0x2dc] ss:$24 sps:$4 sm:$0xff]  }
 0x149   : > { %v1839_v37 = vpop.f32.mrf.mxu0  ;;  %v1967_v38 = vpop.f32.mrf.mxu1  ;;  %v3887_v32 = vld [vmem:[%s4210_s10 + $0x2e4] ss:$24 sps:$4 sm:$0xff]  }
 0x14b   : > { %v4546_v39 = vpop.f32.mrf.mxu0  ;;  %v4548_v40 = vpop.f32.mrf.mxu1 }
 0x14d   : > { %v1842_v45 = vpop.f32.mrf.mxu0  ;;  %v1970_v46 = vpop.f32.mrf.mxu1 }
 0x14e   : > { %v3882_v45 = vld [vmem:[%s4210_s10 + $0x2d8] ss:$24 sps:$4 sm:$0xff]  }
 0x14f   : > { %v4554_v47 = vpop.f32.mrf.mxu0  ;;  %v4556_v48 = vpop.f32.mrf.mxu1  ;;  %2197 = vmatmul.mubr.bf16.gmra.mxu1 %v3856_v41  ;;  %2486 = vmatmul.mubr.bf16.gmra.mxu0 %v3857_v42  ;;  %v3885_v46 = vld [vmem:[%s4210_s10 + $0x2e0] ss:$24 sps:$4 sm:$0xff]  }
 0x150   : > { %2204 = vmatprep.mubr.bf16.mxu1 %v3858_v43  ;;  %2493 = vmatprep.mubr.bf16.mxu0 %v3860_v44 }
 0x151   : > { %v1847_v49 = vpop.f32.mrf.mxu0  ;;  %v1975_v50 = vpop.f32.mrf.mxu1 }
 0x152   : > { %v3890_v49 = vld [vmem:[%s4210_s10 + $0x30c] ss:$24 sps:$4 sm:$0xff]  }
 0x153   : > { %v4558_v51 = vpop.f32.mrf.mxu0  ;;  %v4560_v52 = vpop.f32.mrf.mxu1  ;;  %v3893_v50 = vld [vmem:[%s4210_s10 + $0x314] ss:$24 sps:$4 sm:$0xff]  }
 0x155   : > { %v1850_v57 = vpop.f32.mrf.mxu0  ;;  %v1978_v58 = vpop.f32.mrf.mxu1 }
 0x157   : > { %v4566_v59 = vpop.f32.mrf.mxu0  ;;  %v4568_v60 = vpop.f32.mrf.mxu1  ;;  %2205 = vmatmul.mubr.bf16.gmra.mxu1 %v3862_v53  ;;  %2494 = vmatmul.mubr.bf16.gmra.mxu0 %v3863_v54 }
 0x158   : > { %2212 = vmatprep.mubr.bf16.mxu1 %v3866_v55  ;;  %2501 = vmatprep.mubr.bf16.mxu0 %v3869_v56 }
 0x159   : > { %v1855_v61 = vpop.f32.mrf.mxu0  ;;  %v1983_v62 = vpop.f32.mrf.mxu1 }
 0x15b   : > { %v4570_v63 = vpop.f32.mrf.mxu0  ;;  %v4572_v1 = vpop.f32.mrf.mxu1 }
 0x15d   : > { %v1858_v6 = vpop.f32.mrf.mxu0  ;;  %v1986_v7 = vpop.f32.mrf.mxu1 }
 0x15f   : > { %v4578_v8 = vpop.f32.mrf.mxu0  ;;  %v4580_v9 = vpop.f32.mrf.mxu1  ;;  %2213 = vmatmul.mubr.bf16.gmra.mxu1 %v3864_v2  ;;  %2502 = vmatmul.mubr.bf16.gmra.mxu0 %v3867_v3  ;;  %v3888_v2 = vld [vmem:[%s4210_s10 + $0x308] ss:$24 sps:$4 sm:$0xff]  }
 0x160   : > { %2220 = vmatprep.mubr.bf16.mxu1 %v3872_v4  ;;  %2509 = vmatprep.mubr.bf16.mxu0 %v3875_v5  ;;  %v3891_v3 = vld [vmem:[%s4210_s10 + $0x310] ss:$24 sps:$4 sm:$0xff]   ;;  %v3896_v4 = vld [vmem:[%s4210_s10 + $0x33c] ss:$24 sps:$4 sm:$0xff]  }
 0x161   : > { %v1863_v10 = vpop.f32.mrf.mxu0  ;;  %v1991_v11 = vpop.f32.mrf.mxu1  ;;  %v3899_v5 = vld [vmem:[%s4210_s10 + $0x344] ss:$24 sps:$4 sm:$0xff]  }
 0x163   : > { %v4582_v12 = vpop.f32.mrf.mxu0  ;;  %v4584_v13 = vpop.f32.mrf.mxu1 }
 0x165   : > { %v1866_v18 = vpop.f32.mrf.mxu0  ;;  %v1994_v19 = vpop.f32.mrf.mxu1 }
 0x166   : > { %v3894_v18 = vld [vmem:[%s4210_s10 + $0x338] ss:$24 sps:$4 sm:$0xff]  }
 0x167   : > { %v4590_v20 = vpop.f32.mrf.mxu0  ;;  %v4592_v21 = vpop.f32.mrf.mxu1  ;;  %2221 = vmatmul.mubr.bf16.gmra.mxu1 %v3870_v14  ;;  %2510 = vmatmul.mubr.bf16.gmra.mxu0 %v3873_v15  ;;  %v3897_v19 = vld [vmem:[%s4210_s10 + $0x340] ss:$24 sps:$4 sm:$0xff]  }
 0x168   : > { %2228 = vmatprep.mubr.bf16.mxu1 %v3878_v16  ;;  %2517 = vmatprep.mubr.bf16.mxu0 %v3881_v17 }
 0x169   : > { %v1871_v22 = vpop.f32.mrf.mxu0  ;;  %v1999_v23 = vpop.f32.mrf.mxu1 }
 0x16a   : > { %v3902_v22 = vld [vmem:[%s4210_s10 + $0x36c] ss:$24 sps:$4 sm:$0xff]  }
 0x16b   : > { %v4594_v26 = vpop.f32.mrf.mxu0  ;;  %v4596_v27 = vpop.f32.mrf.mxu1  ;;  %v3905_v23 = vld [vmem:[%s4210_s10 + $0x374] ss:$24 sps:$4 sm:$0xff]  }
 0x16d   : > { %v1874_v33 = vpop.f32.mrf.mxu0  ;;  %v2002_v34 = vpop.f32.mrf.mxu1 }
 0x16f   : > { %v4602_v37 = vpop.f32.mrf.mxu0  ;;  %v4604_v38 = vpop.f32.mrf.mxu1  ;;  %2229 = vmatmul.mubr.bf16.gmra.mxu1 %v3876_v29  ;;  %2518 = vmatmul.mubr.bf16.gmra.mxu0 %v3879_v30 }
 0x170   : > { %2236 = vmatprep.mubr.bf16.mxu1 %v3884_v31  ;;  %2525 = vmatprep.mubr.bf16.mxu0 %v3887_v32 }
 0x171   : > { %v1879_v41 = vpop.f32.mrf.mxu0  ;;  %v2007_v42 = vpop.f32.mrf.mxu1 }
 0x173   : > { %v4606_v43 = vpop.f32.mrf.mxu0  ;;  %v4608_v44 = vpop.f32.mrf.mxu1 }
 0x174   : > { %5045 = vst [vmem:[#allocation8_spill] sm:$0xff] %v4608_v44  ;;  %v3953_v44 = vld [vmem:[%s4210_s10 + $0x4f4] ss:$24 sps:$4 sm:$0xff]  }
 0x175   : > { %v1882_v53 = vpop.f32.mrf.mxu0  ;;  %v2010_v54 = vpop.f32.mrf.mxu1 }
 0x177   : > { %v4614_v55 = vpop.f32.mrf.mxu0  ;;  %v4616_v56 = vpop.f32.mrf.mxu1  ;;  %2237 = vmatmul.mubr.bf16.gmra.mxu1 %v3882_v45  ;;  %2526 = vmatmul.mubr.bf16.gmra.mxu0 %v3885_v46  ;;  %v3900_v45 = vld [vmem:[%s4210_s10 + $0x368] ss:$24 sps:$4 sm:$0xff]  }
 0x178   : > { %5046 = vst [vmem:[#allocation9_spill] sm:$0xff] %v4616_v56  ;;  %2244 = vmatprep.mubr.bf16.mxu1 %v3890_v49  ;;  %2533 = vmatprep.mubr.bf16.mxu0 %v3893_v50  ;;  %v3903_v46 = vld [vmem:[%s4210_s10 + $0x370] ss:$24 sps:$4 sm:$0xff]   ;;  %v3908_v49 = vld [vmem:[%s4210_s10 + $0x39c] ss:$24 sps:$4 sm:$0xff]  }
 0x179   : > { %v1887_v57 = vpop.f32.mrf.mxu0  ;;  %v2015_v58 = vpop.f32.mrf.mxu1  ;;  %v3911_v50 = vld [vmem:[%s4210_s10 + $0x3a4] ss:$24 sps:$4 sm:$0xff]  }
 0x17a   : > { %v3950_v56 = vld [vmem:[%s4210_s10 + $0x4ec] ss:$24 sps:$4 sm:$0xff]  }
 0x17b   : > { %v4618_v61 = vpop.f32.mrf.mxu0  ;;  %v4620_v62 = vpop.f32.mrf.mxu1 }
 0x17c   : > { %5047 = vst [vmem:[#allocation10_spill] sm:$0xff] %v4620_v62 }
 0x17d   : > { %v1890_v6 = vpop.f32.mrf.mxu0  ;;  %v2018_v7 = vpop.f32.mrf.mxu1 }
 0x17e   : > { %v3906_v6 = vld [vmem:[%s4210_s10 + $0x398] ss:$24 sps:$4 sm:$0xff]  }
 0x17f   : > { %v4626_v10 = vpop.f32.mrf.mxu0  ;;  %v4628_v11 = vpop.f32.mrf.mxu1  ;;  %2245 = vmatmul.mubr.bf16.gmra.mxu1 %v3888_v2  ;;  %2534 = vmatmul.mubr.bf16.gmra.mxu0 %v3891_v3  ;;  %v3909_v7 = vld [vmem:[%s4210_s10 + $0x3a0] ss:$24 sps:$4 sm:$0xff]  }
 0x180   : > { %5048 = vst [vmem:[#allocation11_spill] sm:$0xff] %v4628_v11  ;;  %2252 = vmatprep.mubr.bf16.mxu1 %v3896_v4  ;;  %2541 = vmatprep.mubr.bf16.mxu0 %v3899_v5  ;;  %v3945_v11 = vld [vmem:[%s4210_s10 + $0x4c0] ss:$24 sps:$4 sm:$0xff]  }
 0x181   : > { %v1895_v14 = vpop.f32.mrf.mxu0  ;;  %v2023_v15 = vpop.f32.mrf.mxu1 }
 0x182   : > { %v3914_v14 = vld [vmem:[%s4210_s10 + $0x3cc] ss:$24 sps:$4 sm:$0xff]  }
 0x183   : > { %v4630_v16 = vpop.f32.mrf.mxu0  ;;  %v4632_v17 = vpop.f32.mrf.mxu1  ;;  %v3917_v15 = vld [vmem:[%s4210_s10 + $0x3d4] ss:$24 sps:$4 sm:$0xff]  }
 0x184   : > { %5049 = vst [vmem:[#allocation12_spill] sm:$0xff] %v4632_v17  ;;  %v3942_v17 = vld [vmem:[%s4210_s10 + $0x4b8] ss:$24 sps:$4 sm:$0xff]  }
 0x185   : > { %v1898_v29 = vpop.f32.mrf.mxu0  ;;  %v2026_v30 = vpop.f32.mrf.mxu1 }
 0x187   : > { %v4638_v31 = vpop.f32.mrf.mxu0  ;;  %v4640_v32 = vpop.f32.mrf.mxu1  ;;  %2253 = vmatmul.mubr.bf16.gmra.mxu1 %v3894_v18  ;;  %2542 = vmatmul.mubr.bf16.gmra.mxu0 %v3897_v19 }
 0x188   : > { %5050 = vst [vmem:[#allocation13_spill] sm:$0xff] %v4640_v32  ;;  %2260 = vmatprep.mubr.bf16.mxu1 %v3902_v22  ;;  %2549 = vmatprep.mubr.bf16.mxu0 %v3905_v23 }
 0x189   : > { %v1903_v33 = vpop.f32.mrf.mxu0  ;;  %v2031_v34 = vpop.f32.mrf.mxu1 }
 0x18b   : > { %v4642_v41 = vpop.f32.mrf.mxu0  ;;  %v4644_v42 = vpop.f32.mrf.mxu1 }
 0x18c   : > { %5051 = vst [vmem:[#allocation14_spill] sm:$0xff] %v4644_v42  ;;  %v4723_v42 = vld [vmem:[#allocation4] ss:$0 sm:$0xff] }
 0x18d   : > { %v1906_v53 = vpop.f32.mrf.mxu0  ;;  %v2034_v54 = vpop.f32.mrf.mxu1 }
 0x18f   : > { %v4650_v57 = vpop.f32.mrf.mxu0  ;;  %v4652_v58 = vpop.f32.mrf.mxu1  ;;  %2261 = vmatmul.mubr.bf16.gmra.mxu1 %v3900_v45  ;;  %2550 = vmatmul.mubr.bf16.gmra.mxu0 %v3903_v46  ;;  %v3912_v45 = vld [vmem:[%s4210_s10 + $0x3c8] ss:$24 sps:$4 sm:$0xff]  }
 0x190   : > { %5052 = vst [vmem:[#allocation15_spill] sm:$0xff] %v4652_v58  ;;  %2268 = vmatprep.mubr.bf16.mxu1 %v3908_v49  ;;  %2557 = vmatprep.mubr.bf16.mxu0 %v3911_v50  ;;  %v3915_v46 = vld [vmem:[%s4210_s10 + $0x3d0] ss:$24 sps:$4 sm:$0xff]   ;;  %v3920_v49 = vld [vmem:[%s4210_s10 + $0x3fc] ss:$24 sps:$4 sm:$0xff]  }
 0x191   : > { %v1911_v2 = vpop.f32.mrf.mxu0  ;;  %v2039_v3 = vpop.f32.mrf.mxu1  ;;  %v3923_v50 = vld [vmem:[%s4210_s10 + $0x404] ss:$24 sps:$4 sm:$0xff]  }
 0x192   : > { %v3947_v58 = vld [vmem:[%s4210_s10 + $0x4c4] ss:$24 sps:$4 sm:$0xff]  }
 0x193   : > { %v4654_v4 = vpop.f32.mrf.mxu0  ;;  %v4656_v5 = vpop.f32.mrf.mxu1 }
 0x194   : > { %5053 = vst [vmem:[#allocation16_spill] sm:$0xff] %v4656_v5  ;;  %v3938_v5 = vld [vmem:[%s4210_s10 + $0x48c] ss:$24 sps:$4 sm:$0xff]  }
 0x195   : > { %v1914_v18 = vpop.f32.mrf.mxu0  ;;  %v2042_v19 = vpop.f32.mrf.mxu1 }
 0x196   : > { %v3918_v18 = vld [vmem:[%s4210_s10 + $0x3f8] ss:$24 sps:$4 sm:$0xff]  }
 0x197   : > { %v4662_v22 = vpop.f32.mrf.mxu0  ;;  %v4664_v23 = vpop.f32.mrf.mxu1  ;;  %2269 = vmatmul.mubr.bf16.gmra.mxu1 %v3906_v6  ;;  %2558 = vmatmul.mubr.bf16.gmra.mxu0 %v3909_v7  ;;  %v3921_v19 = vld [vmem:[%s4210_s10 + $0x400] ss:$24 sps:$4 sm:$0xff]  }
 0x198   : > { %5054 = vst [vmem:[#allocation17_spill] sm:$0xff] %v4664_v23  ;;  %2276 = vmatprep.mubr.bf16.mxu1 %v3914_v14  ;;  %2565 = vmatprep.mubr.bf16.mxu0 %v3917_v15  ;;  %v3933_v23 = vld [vmem:[%s4210_s10 + $0x460] ss:$24 sps:$4 sm:$0xff]  }
 0x199   : > { %v1919_v29 = vpop.f32.mrf.mxu0  ;;  %v2047_v30 = vpop.f32.mrf.mxu1 }
 0x19a   : > { %v3926_v29 = vld [vmem:[%s4210_s10 + $0x42c] ss:$24 sps:$4 sm:$0xff]  }
 0x19b   : > { %v4666_v33 = vpop.f32.mrf.mxu0  ;;  %v4668_v34 = vpop.f32.mrf.mxu1  ;;  %v3929_v30 = vld [vmem:[%s4210_s10 + $0x434] ss:$24 sps:$4 sm:$0xff]  }
 0x19c   : > { %5055 = vst [vmem:[#allocation18_spill] sm:$0xff] %v4668_v34 }
 0x19d   : > { %v1922_v53 = vpop.f32.mrf.mxu0  ;;  %v2050_v54 = vpop.f32.mrf.mxu1 }
 0x19f   : > { %v4674_v2 = vpop.f32.mrf.mxu0  ;;  %v4676_v3 = vpop.f32.mrf.mxu1  ;;  %2277 = vmatmul.mubr.bf16.gmra.mxu1 %v3912_v45  ;;  %2566 = vmatmul.mubr.bf16.gmra.mxu0 %v3915_v46 }
 0x1a0   : > { %5056 = vst [vmem:[#allocation19_spill] sm:$0xff] %v4676_v3  ;;  %2284 = vmatprep.mubr.bf16.mxu1 %v3920_v49  ;;  %2573 = vmatprep.mubr.bf16.mxu0 %v3923_v50  ;;  %v3927_v3 = vld [vmem:[%s4210_s10 + $0x430] ss:$24 sps:$4 sm:$0xff]  }
 0x1a1   : > { %v1927_v6 = vpop.f32.mrf.mxu0  ;;  %v2055_v7 = vpop.f32.mrf.mxu1 }
 0x1a3   : > { %v4678_v14 = vpop.f32.mrf.mxu0  ;;  %v4680_v15 = vpop.f32.mrf.mxu1 }
 0x1a4   : > { %5057 = vst [vmem:[#allocation20_spill] sm:$0xff] %v4680_v15  ;;  %v3924_v15 = vld [vmem:[%s4210_s10 + $0x428] ss:$24 sps:$4 sm:$0xff]  }
 0x1a5   : > { %v1930_v53 = vpop.f32.mrf.mxu0  ;;  %v2058_v54 = vpop.f32.mrf.mxu1 }
 0x1a6   : > { %v3932_v53 = vld [vmem:[%s4210_s10 + $0x45c] ss:$24 sps:$4 sm:$0xff]  }
 0x1a7   : > { %v4686_v45 = vpop.f32.mrf.mxu0  ;;  %v4688_v46 = vpop.f32.mrf.mxu1  ;;  %2285 = vmatmul.mubr.bf16.gmra.mxu1 %v3918_v18  ;;  %2574 = vmatmul.mubr.bf16.gmra.mxu0 %v3921_v19  ;;  %v3935_v54 = vld [vmem:[%s4210_s10 + $0x464] ss:$24 sps:$4 sm:$0xff]  }
 0x1a8   : > { %5058 = vst [vmem:[#allocation21_spill] sm:$0xff] %v4688_v46  ;;  %2292 = vmatprep.mubr.bf16.mxu1 %v3926_v29  ;;  %2581 = vmatprep.mubr.bf16.mxu0 %v3929_v30 }
 0x1a9   : > { %v1935_v49 = vpop.f32.mrf.mxu0  ;;  %v2063_v50 = vpop.f32.mrf.mxu1 }
 0x1ab   : > { %v4690_v6 = vpop.f32.mrf.mxu0  ;;  %v4692_v7 = vpop.f32.mrf.mxu1 }
 0x1ac   : > { %5059 = vst [vmem:[#allocation22_spill] sm:$0xff] %v4692_v7  ;;  %v3930_v7 = vld [vmem:[%s4210_s10 + $0x458] ss:$24 sps:$4 sm:$0xff]  }
 0x1ad   : > { %v1938_v34 = vpop.f32.mrf.mxu0  ;;  %v2066_v46 = vpop.f32.mrf.mxu1 }
 0x1ae   : > { %v3941_v34 = vld [vmem:[%s4210_s10 + $0x494] ss:$24 sps:$4 sm:$0xff]  }
 0x1af   : > { %v4698_v18 = vpop.f32.mrf.mxu0  ;;  %v4700_v19 = vpop.f32.mrf.mxu1  ;;  %2293 = vmatmul.mubr.bf16.gmra.mxu1 %v3924_v15  ;;  %2582 = vmatmul.mubr.bf16.gmra.mxu0 %v3927_v3 }
 0x1b0   : > { %5060 = vst [vmem:[#allocation23_spill] sm:$0xff] %v4700_v19  ;;  %2300 = vmatprep.mubr.bf16.mxu1 %v3932_v53  ;;  %2589 = vmatprep.mubr.bf16.mxu0 %v3935_v54 }
 0x1b1   : > { %v1943_v29 = vpop.f32.mrf.mxu0  ;;  %v2071_v30 = vpop.f32.mrf.mxu1 }
 0x1b3   : > { %v4702_v49 = vpop.f32.mrf.mxu0  ;;  %v4704_v50 = vpop.f32.mrf.mxu1 }
 0x1b4   : > { %5061 = vst [vmem:[#allocation24_spill] sm:$0xff] %v4704_v50  ;;  %v3939_v50 = vld [vmem:[%s4210_s10 + $0x490] ss:$24 sps:$4 sm:$0xff]  }
 0x1b5   : > { %v1946_v46 = vpop.f32.mrf.mxu0  ;;  %v2074_v19 = vpop.f32.mrf.mxu1 }
 0x1b6   : > { %v3936_v46 = vld [vmem:[%s4210_s10 + $0x488] ss:$24 sps:$4 sm:$0xff]   ;;  %v3944_v19 = vld [vmem:[%s4210_s10 + $0x4bc] ss:$24 sps:$4 sm:$0xff]  }
 0x1b7   : > { %v4710_v3 = vpop.f32.mrf.mxu0  ;;  %v4712_v15 = vpop.f32.mrf.mxu1  ;;  %2301 = vmatmul.mubr.bf16.gmra.mxu1 %v3930_v7  ;;  %2590 = vmatmul.mubr.bf16.gmra.mxu0 %v3933_v23  ;;  %v1830_v23 = vadd.f32 %v4723_v42, %v4530_v24 }
 0x1b8   : > { %5062 = vst [vmem:[#allocation25_spill] sm:$0xff] %v4712_v15  ;;  %2308 = vmatprep.mubr.bf16.mxu1 %v3938_v5  ;;  %2597 = vmatprep.mubr.bf16.mxu0 %v3941_v34 }
 0x1b9   : > { %v1951_v53 = vpop.f32.mrf.mxu0  ;;  %v2079_v54 = vpop.f32.mrf.mxu1 }
 0x1bb   : > { %v4715_v29 = vpop.f32.mrf.mxu0  ;;  %v4717_v30 = vpop.f32.mrf.mxu1 }
 0x1bc   : > { %5063 = vst [vmem:[#allocation26_spill] sm:$0xff] %v4717_v30 }
 0x1bd   : > { %v1954_v32 = vpop.f32.mrf.mxu0  ;;  %v2082_v15 = vpop.f32.mrf.mxu1 }
 0x1be   : > { %v1833_v32 = vadd.f32 %v4723_v42, %v4534_v0  ;;  %v1838_v0 = vadd.f32 %v4723_v42, %v4542_v35  ;;  %v1841_v35 = vadd.f32 %v4723_v42, %v4546_v39 }
 0x1bf   : > { %v2118_v5 = vpop.f32.mrf.mxu1  ;;  %2309 = vmatmul.mubr.bf16.gmra.mxu1 %v3936_v46  ;;  %v2407_v7 = vpop.f32.mrf.mxu0  ;;  %2598 = vmatmul.mubr.bf16.gmra.mxu0 %v3939_v50 }
 0x1c0   : > { %v2119_v34 = vadd.f32 %v2118_v5, %v1830_v23  ;;  %2316 = vmatprep.mubr.bf16.mxu1 %v3944_v19  ;;  %2605 = vmatprep.mubr.bf16.mxu0 %v3947_v58 }
 0x1c1   : > { %v2120_v53 = vpop.f32.mrf.mxu1  ;;  %v2409_v54 = vpop.f32.mrf.mxu0 }
 0x1c2   : > { %v2408_v15 = vadd.f32 %v2407_v7, %v2119_v34 }
 0x1c3   : > { %v2121_v24 = vpop.f32.mrf.mxu1  ;;  %v2410_v30 = vpop.f32.mrf.mxu0 }
 0x1c4   : > { %v2662_v62 = vmax.f32 %v2408_v15, 0.0  ;;  %v2122_v46 = vadd.f32 %v2121_v24, %v1833_v32  ;;  %v3948_v24 = vld [vmem:[%s4210_s10 + $0x4e8] ss:$24 sps:$4 sm:$0xff]  }
 0x1c5   : > { %v2123_v58 = vpop.f32.mrf.mxu1  ;;  %v2412_v50 = vpop.f32.mrf.mxu0 }
 0x1c6   : > { %v3480_v19 = vpack.c.bf16 %v2662_v62, %v2662_v62  ;;  %v2411_v23 = vadd.f32 %v2410_v30, %v2122_v46  ;;  %v3956_v50 = vld [vmem:[%s4210_s10 + $0x51c] ss:$24 sps:$4 sm:$0xff]  }
 0x1c7   : > { %v2126_v5 = vpop.f32.mrf.mxu1  ;;  %2317 = vmatmul.mubr.bf16.gmra.mxu1 %v3942_v17  ;;  %v2415_v7 = vpop.f32.mrf.mxu0  ;;  %2606 = vmatmul.mubr.bf16.gmra.mxu0 %v3945_v11  ;;  %v3951_v11 = vld [vmem:[%s4210_s10 + $0x4f0] ss:$24 sps:$4 sm:$0xff]  }
 0x1c8   : > { %2983 = vst.msk [vmem:[%s4736_s20] sm:$0xf] %vm2982_vm0, %v3480_v19  ;;  %v2663_v34 = vmax.f32 %v2411_v23, 0.0  ;;  %v2127_v53 = vadd.f32 %v2126_v5, %v1838_v0  ;;  %2324 = vmatprep.mubr.bf16.mxu1 %v3950_v56  ;;  %2613 = vmatprep.mubr.bf16.mxu0 %v3953_v44  ;;  %v3959_v0 = vld [vmem:[%s4210_s10 + $0x524] ss:$24 sps:$4 sm:$0xff]   ;;  %v1846_v19 = vadd.f32 %v4723_v42, %v4554_v47 }
 0x1c9   : > { %v2128_v54 = vpop.f32.mrf.mxu1  ;;  %v2417_v32 = vpop.f32.mrf.mxu0  ;;  %v1849_v47 = vadd.f32 %v4723_v42, %v4558_v51 }
 0x1ca   : > { %v3481_v62 = vpack.c.bf16 %v2663_v34, %v2663_v34  ;;  %v2416_v30 = vadd.f32 %v2415_v7, %v2127_v53 }
 0x1cb   : > { %v2129_v17 = vpop.f32.mrf.mxu1  ;;  %v2418_v15 = vpop.f32.mrf.mxu0 }
 0x1cc   : > { %2984 = vst.msk [vmem:[%s4736_s20 + $0x4] sm:$0xf] %vm2982_vm0, %v3481_v62  ;;  %v2664_v46 = vmax.f32 %v2416_v30, 0.0  ;;  %v2130_v58 = vadd.f32 %v2129_v17, %v1841_v35 }
 0x1cd   : > { %v2131_v56 = vpop.f32.mrf.mxu1  ;;  %v2420_v44 = vpop.f32.mrf.mxu0 }
 0x1ce   : > { %v3482_v23 = vpack.c.bf16 %v2664_v46, %v2664_v46  ;;  %v2419_v39 = vadd.f32 %v2418_v15, %v2130_v58  ;;  %v3954_v15 = vld [vmem:[%s4210_s10 + $0x518] ss:$24 sps:$4 sm:$0xff]   ;;  %v3962_v58 = vld [vmem:[%s4210_s10 + $0x54c] ss:$24 sps:$4 sm:$0xff]   ;;  %v1854_v44 = vadd.f32 %v4723_v42, %v4566_v59  ;;  %v1857_v59 = vadd.f32 %v4723_v42, %v4570_v63 }
 0x1cf   : > { %v2134_v5 = vpop.f32.mrf.mxu1  ;;  %2325 = vmatmul.mubr.bf16.gmra.mxu1 %v3948_v24  ;;  %v2423_v7 = vpop.f32.mrf.mxu0  ;;  %2614 = vmatmul.mubr.bf16.gmra.mxu0 %v3951_v11  ;;  %v3957_v24 = vld [vmem:[%s4210_s10 + $0x520] ss:$24 sps:$4 sm:$0xff]   ;;  %v3965_v56 = vld [vmem:[%s4210_s10 + $0x554] ss:$24 sps:$4 sm:$0xff]  }
 0x1d0   : > { %2985 = vst.msk [vmem:[%s4736_s20 + $0x8] sm:$0xf] %vm2982_vm0, %v3482_v23  ;;  %v2665_v34 = vmax.f32 %v2419_v39, 0.0  ;;  %v2135_v53 = vadd.f32 %v2134_v5, %v1846_v19  ;;  %2332 = vmatprep.mubr.bf16.mxu1 %v3956_v50  ;;  %2621 = vmatprep.mubr.bf16.mxu0 %v3959_v0 }
 0x1d1   : > { %v2136_v54 = vpop.f32.mrf.mxu1  ;;  %v2425_v32 = vpop.f32.mrf.mxu0 }
 0x1d2   : > { %v3483_v35 = vpack.c.bf16 %v2665_v34, %v2665_v34  ;;  %v2424_v62 = vadd.f32 %v2423_v7, %v2135_v53 }
 0x1d3   : > { %v2137_v30 = vpop.f32.mrf.mxu1  ;;  %v2426_v17 = vpop.f32.mrf.mxu0 }
 0x1d4   : > { %2986 = vst.msk [vmem:[%s4736_s20 + $0xc] sm:$0xf] %vm2982_vm0, %v3483_v35  ;;  %v2666_v11 = vmax.f32 %v2424_v62, 0.0  ;;  %v2138_v46 = vadd.f32 %v2137_v30, %v1849_v47  ;;  %v3960_v62 = vld [vmem:[%s4210_s10 + $0x548] ss:$24 sps:$4 sm:$0xff]  }
 0x1d5   : > { %v2139_v50 = vpop.f32.mrf.mxu1  ;;  %v2428_v0 = vpop.f32.mrf.mxu0  ;;  %v3963_v30 = vld [vmem:[%s4210_s10 + $0x550] ss:$24 sps:$4 sm:$0xff]  }
 0x1d6   : > { %v3484_v19 = vpack.c.bf16 %v2666_v11, %v2666_v11  ;;  %v2427_v51 = vadd.f32 %v2426_v17, %v2138_v46  ;;  %v3971_v11 = vld [vmem:[%s4210_s10 + $0x584] ss:$24 sps:$4 sm:$0xff]  }
 0x1d7   : > { %v2142_v23 = vpop.f32.mrf.mxu1  ;;  %2333 = vmatmul.mubr.bf16.gmra.mxu1 %v3954_v15  ;;  %v2431_v39 = vpop.f32.mrf.mxu0  ;;  %2622 = vmatmul.mubr.bf16.gmra.mxu0 %v3957_v24  ;;  %v3968_v24 = vld [vmem:[%s4210_s10 + $0x57c] ss:$24 sps:$4 sm:$0xff]  }
 0x1d8   : > { %2987 = vst.msk [vmem:[%s4736_s20 + $0x10] sm:$0xf] %vm2982_vm0, %v3484_v19  ;;  %v2667_v5 = vmax.f32 %v2427_v51, 0.0  ;;  %v2143_v7 = vadd.f32 %v2142_v23, %v1854_v44  ;;  %2340 = vmatprep.mubr.bf16.mxu1 %v3962_v58  ;;  %2629 = vmatprep.mubr.bf16.mxu0 %v3965_v56  ;;  %v1862_v56 = vadd.f32 %v4723_v42, %v4578_v8 }
 0x1d9   : > { %v2144_v34 = vpop.f32.mrf.mxu1  ;;  %v2433_v53 = vpop.f32.mrf.mxu0  ;;  %v1865_v8 = vadd.f32 %v4723_v42, %v4582_v12 }
 0x1da   : > { %v3485_v54 = vpack.c.bf16 %v2667_v5, %v2667_v5  ;;  %v2432_v32 = vadd.f32 %v2431_v39, %v2143_v7 }
 0x1db   : > { %v2145_v47 = vpop.f32.mrf.mxu1  ;;  %v2434_v35 = vpop.f32.mrf.mxu0 }
 0x1dc   : > { %2988 = vst.msk [vmem:[%s4736_s20 + $0x14] sm:$0xf] %vm2982_vm0, %v3485_v54  ;;  %v2668_v17 = vmax.f32 %v2432_v32, 0.0  ;;  %v2146_v15 = vadd.f32 %v2145_v47, %v1857_v59  ;;  %v3966_v59 = vld [vmem:[%s4210_s10 + $0x578] ss:$24 sps:$4 sm:$0xff]  }
 0x1dd   : > { %v2147_v46 = vpop.f32.mrf.mxu1  ;;  %v2436_v58 = vpop.f32.mrf.mxu0  ;;  %v3969_v54 = vld [vmem:[%s4210_s10 + $0x580] ss:$24 sps:$4 sm:$0xff]  }
 0x1de   : > { %v3486_v50 = vpack.c.bf16 %v2668_v17, %v2668_v17  ;;  %v2435_v63 = vadd.f32 %v2434_v35, %v2146_v15  ;;  %v3974_v35 = vld [vmem:[%s4210_s10 + $0x5ac] ss:$24 sps:$4 sm:$0xff]   ;;  %v1870_v15 = vadd.f32 %v4723_v42, %v4590_v20  ;;  %v1873_v20 = vadd.f32 %v4723_v42, %v4594_v26 }
 0x1df   : > { %v2150_v0 = vpop.f32.mrf.mxu1  ;;  %2341 = vmatmul.mubr.bf16.gmra.mxu1 %v3960_v62  ;;  %v2439_v44 = vpop.f32.mrf.mxu0  ;;  %2630 = vmatmul.mubr.bf16.gmra.mxu0 %v3963_v30  ;;  %v3977_v62 = vld [vmem:[%s4210_s10 + $0x5b4] ss:$24 sps:$4 sm:$0xff]  }
 0x1e0   : > { %2989 = vst.msk [vmem:[%s4736_s20 + $0x18] sm:$0xf] %vm2982_vm0, %v3486_v50  ;;  %v2669_v19 = vmax.f32 %v2435_v63, 0.0  ;;  %v2151_v51 = vadd.f32 %v2150_v0, %v1862_v56  ;;  %2348 = vmatprep.mubr.bf16.mxu1 %v3968_v24  ;;  %2637 = vmatprep.mubr.bf16.mxu0 %v3971_v11 }
 0x1e1   : > { %v2152_v23 = vpop.f32.mrf.mxu1  ;;  %v2441_v39 = vpop.f32.mrf.mxu0 }
 0x1e2   : > { %v3487_v5 = vpack.c.bf16 %v2669_v19, %v2669_v19  ;;  %v2440_v7 = vadd.f32 %v2439_v44, %v2151_v51  ;;  %v3972_v23 = vld [vmem:[%s4210_s10 + $0x5a8] ss:$24 sps:$4 sm:$0xff]  }
 0x1e3   : > { %v2153_v34 = vpop.f32.mrf.mxu1  ;;  %v2442_v53 = vpop.f32.mrf.mxu0  ;;  %v3975_v39 = vld [vmem:[%s4210_s10 + $0x5b0] ss:$24 sps:$4 sm:$0xff]  }
 0x1e4   : > { %2990 = vst.msk [vmem:[%s4736_s20 + $0x1c] sm:$0xf] %vm2982_vm0, %v3487_v5  ;;  %v2670_v32 = vmax.f32 %v2440_v7, 0.0  ;;  %v2154_v47 = vadd.f32 %v2153_v34, %v1865_v8  ;;  %v3980_v7 = vld [vmem:[%s4210_s10 + $0x5dc] ss:$24 sps:$4 sm:$0xff]  }
 0x1e5   : > { %v2155_v30 = vpop.f32.mrf.mxu1  ;;  %v2444_v17 = vpop.f32.mrf.mxu0  ;;  %v3983_v34 = vld [vmem:[%s4210_s10 + $0x5e4] ss:$24 sps:$4 sm:$0xff]  }
 0x1e6   : > { %v3488_v24 = vpack.c.bf16 %v2670_v32, %v2670_v32  ;;  %v2443_v12 = vadd.f32 %v2442_v53, %v2154_v47 }
 0x1e7   : > { %v2158_v11 = vpop.f32.mrf.mxu1  ;;  %2349 = vmatmul.mubr.bf16.gmra.mxu1 %v3966_v59  ;;  %v2447_v46 = vpop.f32.mrf.mxu0  ;;  %2638 = vmatmul.mubr.bf16.gmra.mxu0 %v3969_v54  ;;  %v1878_v54 = vadd.f32 %v4723_v42, %v4602_v37  ;;  %v1881_v37 = vadd.f32 %v4723_v42, %v4606_v43 }
 0x1e8   : > { %2991 = vst.msk [vmem:[%s4736_s20 + $0x20] sm:$0xf] %vm2982_vm0, %v3488_v24  ;;  %v2671_v58 = vmax.f32 %v2443_v12, 0.0  ;;  %v2159_v56 = vadd.f32 %v2158_v11, %v1870_v15  ;;  %2356 = vmatprep.mubr.bf16.mxu1 %v3974_v35  ;;  %2645 = vmatprep.mubr.bf16.mxu0 %v3977_v62 }
 0x1e9   : > { %v2160_v50 = vpop.f32.mrf.mxu1  ;;  %v2449_v63 = vpop.f32.mrf.mxu0 }
 0x1ea   : > { %v3489_v0 = vpack.c.bf16 %v2671_v58, %v2671_v58  ;;  %v2448_v44 = vadd.f32 %v2447_v46, %v2159_v56  ;;  %v3978_v58 = vld [vmem:[%s4210_s10 + $0x5d8] ss:$24 sps:$4 sm:$0xff]  }
 0x1eb   : > { %v2161_v19 = vpop.f32.mrf.mxu1  ;;  %v2450_v51 = vpop.f32.mrf.mxu0  ;;  %v3981_v56 = vld [vmem:[%s4210_s10 + $0x5e0] ss:$24 sps:$4 sm:$0xff]  }
 0x1ec   : > { %2992 = vst.msk [vmem:[%s4736_s20 + $0x24] sm:$0xf] %vm2982_vm0, %v3489_v0  ;;  %v2672_v8 = vmax.f32 %v2448_v44, 0.0  ;;  %v2162_v5 = vadd.f32 %v2161_v19, %v1873_v20  ;;  %v1886_v44 = vadd.f32 %v4723_v42, %v4614_v55 }
 0x1ed   : > { %v2163_v53 = vpop.f32.mrf.mxu1  ;;  %v2452_v59 = vpop.f32.mrf.mxu0 }
 0x1ee   : > { %v3490_v32 = vpack.c.bf16 %v2672_v8, %v2672_v8  ;;  %v2451_v26 = vadd.f32 %v2450_v51, %v2162_v5 }
 0x1ef   : > { %v2166_v47 = vpop.f32.mrf.mxu1  ;;  %2357 = vmatmul.mubr.bf16.gmra.mxu1 %v3972_v23  ;;  %v2455_v35 = vpop.f32.mrf.mxu0  ;;  %2646 = vmatmul.mubr.bf16.gmra.mxu0 %v3975_v39 }
 0x1f0   : > { %2993 = vst.msk [vmem:[%s4736_s20 + $0x28] sm:$0xf] %vm2982_vm0, %v3490_v32  ;;  %v2673_v62 = vmax.f32 %v2451_v26, 0.0  ;;  %v2167_v30 = vadd.f32 %v2166_v47, %v1878_v54  ;;  %2364 = vmatprep.mubr.bf16.mxu1 %v3980_v7  ;;  %2653 = vmatprep.mubr.bf16.mxu0 %v3983_v34  ;;  %v1889_v34 = vadd.f32 %v4723_v42, %v4618_v61 }
 0x1f1   : > { %v2168_v17 = vpop.f32.mrf.mxu1  ;;  %v2457_v15 = vpop.f32.mrf.mxu0 }
 0x1f2   : > { %v3491_v24 = vpack.c.bf16 %v2673_v62, %v2673_v62  ;;  %v2456_v12 = vadd.f32 %v2455_v35, %v2167_v30  ;;  %v1894_v62 = vadd.f32 %v4723_v42, %v4626_v10 }
 0x1f3   : > { %v2169_v11 = vpop.f32.mrf.mxu1  ;;  %v2458_v46 = vpop.f32.mrf.mxu0 }
 0x1f4   : > { %2994 = vst.msk [vmem:[%s4736_s20 + $0x2c] sm:$0xf] %vm2982_vm0, %v3491_v24  ;;  %v2674_v50 = vmax.f32 %v2456_v12, 0.0  ;;  %v2170_v63 = vadd.f32 %v2169_v11, %v1881_v37 }
 0x1f5   : > { %v2171_v20 = vpop.f32.mrf.mxu1  ;;  %v2460_v0 = vpop.f32.mrf.mxu0 }
 0x1f6   : > { %v3492_v19 = vpack.c.bf16 %v2674_v50, %v2674_v50  ;;  %v2459_v51 = vadd.f32 %v2458_v46, %v2170_v63  ;;  %v1897_v46 = vadd.f32 %v4723_v42, %v4630_v16 }
 0x1f7   : > { %v2174_v43 = vpop.f32.mrf.mxu1  ;;  %2365 = vmatmul.mubr.bf16.gmra.mxu1 %v3978_v58  ;;  %v2463_v23 = vpop.f32.mrf.mxu0  ;;  %2654 = vmatmul.mubr.bf16.gmra.mxu0 %v3981_v56 }
 0x1f8   : > { %2995 = vst.msk [vmem:[%s4736_s20 + $0x30] sm:$0xf] %vm2982_vm0, %v3492_v19  ;;  %v2675_v39 = vmax.f32 %v2459_v51, 0.0  ;;  %v2175_v8 = vadd.f32 %v2174_v43, %v1886_v44  ;;  %v1902_v19 = vadd.f32 %v4723_v42, %v4638_v31 }
 0x1f9   : > { %v2176_v5 = vpop.f32.mrf.mxu1  ;;  %v2465_v7 = vpop.f32.mrf.mxu0 }
 0x1fa   : > { %v3493_v53 = vpack.c.bf16 %v2675_v39, %v2675_v39  ;;  %v2464_v59 = vadd.f32 %v2463_v23, %v2175_v8 }
 0x1fb   : > { %v2177_v55 = vpop.f32.mrf.mxu1  ;;  %v2466_v54 = vpop.f32.mrf.mxu0 }
 0x1fc   : > { %2996 = vst.msk [vmem:[%s4736_s20 + $0x34] sm:$0xf] %vm2982_vm0, %v3493_v53  ;;  %v2676_v32 = vmax.f32 %v2464_v59, 0.0  ;;  %v2178_v26 = vadd.f32 %v2177_v55, %v1889_v34  ;;  %v1905_v34 = vadd.f32 %v4723_v42, %v4642_v41 }
 0x1fd   : > { %v2179_v47 = vpop.f32.mrf.mxu1  ;;  %v2468_v35 = vpop.f32.mrf.mxu0 }
 0x1fe   : > { %v3494_v30 = vpack.c.bf16 %v2676_v32, %v2676_v32  ;;  %v2467_v17 = vadd.f32 %v2466_v54, %v2178_v26  ;;  %v1910_v35 = vadd.f32 %v4723_v42, %v4650_v57 }
 0x1ff   : > { %v2182_v15 = vpop.f32.mrf.mxu1  ;;  %v2471_v37 = vpop.f32.mrf.mxu0 }
 0x200   : > { %2997 = vst.msk [vmem:[%s4736_s20 + $0x38] sm:$0xf] %vm2982_vm0, %v3494_v30  ;;  %v2677_v61 = vmax.f32 %v2467_v17, 0.0  ;;  %v2183_v24 = vadd.f32 %v2182_v15, %v1894_v62 }
 0x201   : > { %v2184_v12 = vpop.f32.mrf.mxu1  ;;  %v2473_v11 = vpop.f32.mrf.mxu0 }
 0x202   : > { %v3495_v58 = vpack.c.bf16 %v2677_v61, %v2677_v61  ;;  %v2472_v56 = vadd.f32 %v2471_v37, %v2183_v24  ;;  %v1913_v12 = vadd.f32 %v4723_v42, %v4654_v4 }
 0x203   : > { %v2185_v50 = vpop.f32.mrf.mxu1  ;;  %v2474_v63 = vpop.f32.mrf.mxu0 }
 0x204   : > { %2998 = vst.msk [vmem:[%s4736_s20 + $0x3c] sm:$0xf] %vm2982_vm0, %v3495_v58  ;;  %v2678_v10 = vmax.f32 %v2472_v56, 0.0  ;;  %v2186_v20 = vadd.f32 %v2185_v50, %v1897_v46 }
 0x205   : > { %v2187_v0 = vpop.f32.mrf.mxu1  ;;  %v2476_v44 = vpop.f32.mrf.mxu0 }
 0x206   : > { %v3496_v51 = vpack.c.bf16 %v2678_v10, %v2678_v10  ;;  %v2475_v43 = vadd.f32 %v2474_v63, %v2186_v20  ;;  %v1918_v20 = vadd.f32 %v4723_v42, %v4662_v22 }
 0x207   : > { %v2190_v23 = vpop.f32.mrf.mxu1  ;;  %v2479_v39 = vpop.f32.mrf.mxu0 }
 0x208   : > { %2999 = vst.msk [vmem:[%s4736_s20 + $0x40] sm:$0xf] %vm2982_vm0, %v3496_v51  ;;  %v2679_v16 = vmax.f32 %v2475_v43, 0.0  ;;  %v2191_v8 = vadd.f32 %v2190_v23, %v1902_v19 }
 0x209   : > { %v2192_v5 = vpop.f32.mrf.mxu1  ;;  %v2481_v7 = vpop.f32.mrf.mxu0 }
 0x20a   : > { %v3497_v53 = vpack.c.bf16 %v2679_v16, %v2679_v16  ;;  %v2480_v59 = vadd.f32 %v2479_v39, %v2191_v8  ;;  %v1921_v16 = vadd.f32 %v4723_v42, %v4666_v33 }
 0x20b   : > { %v2193_v55 = vpop.f32.mrf.mxu1  ;;  %v2482_v54 = vpop.f32.mrf.mxu0 }
 0x20c   : > { %3000 = vst.msk [vmem:[%s4736_s20 + $0x44] sm:$0xf] %vm2982_vm0, %v3497_v53  ;;  %v2680_v31 = vmax.f32 %v2480_v59, 0.0  ;;  %v2194_v32 = vadd.f32 %v2193_v55, %v1905_v34 }
 0x20d   : > { %v2195_v26 = vpop.f32.mrf.mxu1  ;;  %v2484_v47 = vpop.f32.mrf.mxu0 }
 0x20e   : > { %v3498_v62 = vpack.c.bf16 %v2680_v31, %v2680_v31  ;;  %v2483_v30 = vadd.f32 %v2482_v54, %v2194_v32  ;;  %v1926_v54 = vadd.f32 %v4723_v42, %v4674_v2 }
 0x20f   : > { %v2198_v17 = vpop.f32.mrf.mxu1  ;;  %v2487_v15 = vpop.f32.mrf.mxu0 }
 0x210   : > { %3001 = vst.msk [vmem:[%s4736_s20 + $0x48] sm:$0xf] %vm2982_vm0, %v3498_v62  ;;  %v2681_v41 = vmax.f32 %v2483_v30, 0.0  ;;  %v2199_v37 = vadd.f32 %v2198_v17, %v1910_v35  ;;  %v1929_v17 = vadd.f32 %v4723_v42, %v4678_v14 }
 0x211   : > { %v2200_v61 = vpop.f32.mrf.mxu1  ;;  %v2489_v24 = vpop.f32.mrf.mxu0 }
 0x212   : > { %v3499_v11 = vpack.c.bf16 %v2681_v41, %v2681_v41  ;;  %v2488_v46 = vadd.f32 %v2487_v15, %v2199_v37 }
 0x213   : > { %v2201_v58 = vpop.f32.mrf.mxu1  ;;  %v2490_v56 = vpop.f32.mrf.mxu0 }
 0x214   : > { %3002 = vst.msk [vmem:[%s4736_s20 + $0x4c] sm:$0xf] %vm2982_vm0, %v3499_v11  ;;  %v2682_v57 = vmax.f32 %v2488_v46, 0.0  ;;  %v2202_v50 = vadd.f32 %v2201_v58, %v1913_v12  ;;  %v1934_v46 = vadd.f32 %v4723_v42, %v4686_v45 }
 0x215   : > { %v2203_v63 = vpop.f32.mrf.mxu1  ;;  %v2492_v10 = vpop.f32.mrf.mxu0 }
 0x216   : > { %v3500_v0 = vpack.c.bf16 %v2682_v57, %v2682_v57  ;;  %v2491_v44 = vadd.f32 %v2490_v56, %v2202_v50 }
 0x217   : > { %v2206_v19 = vpop.f32.mrf.mxu1  ;;  %v2495_v51 = vpop.f32.mrf.mxu0 }
 0x218   : > { %3003 = vst.msk [vmem:[%s4736_s20 + $0x50] sm:$0xf] %vm2982_vm0, %v3500_v0  ;;  %v2683_v4 = vmax.f32 %v2491_v44, 0.0  ;;  %v2207_v43 = vadd.f32 %v2206_v19, %v1918_v20  ;;  %v1937_v0 = vadd.f32 %v4723_v42, %v4690_v6 }
 0x219   : > { %v2208_v23 = vpop.f32.mrf.mxu1  ;;  %v2497_v39 = vpop.f32.mrf.mxu0 }
 0x21a   : > { %v3501_v8 = vpack.c.bf16 %v2683_v4, %v2683_v4  ;;  %v2496_v5 = vadd.f32 %v2495_v51, %v2207_v43 }
 0x21b   : > { %v2209_v7 = vpop.f32.mrf.mxu1  ;;  %v2498_v34 = vpop.f32.mrf.mxu0 }
 0x21c   : > { %3004 = vst.msk [vmem:[%s4736_s20 + $0x54] sm:$0xf] %vm2982_vm0, %v3501_v8  ;;  %v2684_v22 = vmax.f32 %v2496_v5, 0.0  ;;  %v2210_v53 = vadd.f32 %v2209_v7, %v1921_v16  ;;  %v1942_v16 = vadd.f32 %v4723_v42, %v4698_v18 }
 0x21d   : > { %v2211_v59 = vpop.f32.mrf.mxu1  ;;  %v2500_v55 = vpop.f32.mrf.mxu0 }
 0x21e   : > { %v3502_v31 = vpack.c.bf16 %v2684_v22, %v2684_v22  ;;  %v2499_v32 = vadd.f32 %v2498_v34, %v2210_v53  ;;  %v1945_v55 = vadd.f32 %v4723_v42, %v4702_v49 }
 0x21f   : > { %v2214_v26 = vpop.f32.mrf.mxu1  ;;  %v2503_v47 = vpop.f32.mrf.mxu0 }
 0x220   : > { %3005 = vst.msk [vmem:[%s4736_s20 + $0x58] sm:$0xf] %vm2982_vm0, %v3502_v31  ;;  %v2685_v33 = vmax.f32 %v2499_v32, 0.0  ;;  %v2215_v35 = vadd.f32 %v2214_v26, %v1926_v54 }
 0x221   : > { %v2216_v62 = vpop.f32.mrf.mxu1  ;;  %v2505_v30 = vpop.f32.mrf.mxu0 }
 0x222   : > { %v3503_v15 = vpack.c.bf16 %v2685_v33, %v2685_v33  ;;  %v2504_v41 = vadd.f32 %v2503_v47, %v2215_v35  ;;  %v1950_v62 = vadd.f32 %v4723_v42, %v4710_v3 }
 0x223   : > { %v2217_v37 = vpop.f32.mrf.mxu1  ;;  %v2506_v61 = vpop.f32.mrf.mxu0 }
 0x224   : > { %3006 = vst.msk [vmem:[%s4736_s20 + $0x5c] sm:$0xf] %vm2982_vm0, %v3503_v15  ;;  %v2686_v2 = vmax.f32 %v2504_v41, 0.0  ;;  %v2218_v24 = vadd.f32 %v2217_v37, %v1929_v17 }
 0x225   : > { %v2219_v12 = vpop.f32.mrf.mxu1  ;;  %v2508_v11 = vpop.f32.mrf.mxu0 }
 0x226   : > { %v3504_v58 = vpack.c.bf16 %v2686_v2, %v2686_v2  ;;  %v2507_v56 = vadd.f32 %v2506_v61, %v2218_v24  ;;  %v1953_v24 = vadd.f32 %v4723_v42, %v4715_v29 }
 0x227   : > { %v2222_v57 = vpop.f32.mrf.mxu1  ;;  %v2511_v50 = vpop.f32.mrf.mxu0 }
 0x228   : > { %3007 = vst.msk [vmem:[%s4736_s20 + $0x60] sm:$0xf] %vm2982_vm0, %v3504_v58  ;;  %v2687_v14 = vmax.f32 %v2507_v56, 0.0  ;;  %v2223_v63 = vadd.f32 %v2222_v57, %v1934_v46 }
 0x229   : > { %v2224_v10 = vpop.f32.mrf.mxu1  ;;  %v2513_v20 = vpop.f32.mrf.mxu0 }
 0x22a   : > { %v3505_v44 = vpack.c.bf16 %v2687_v14, %v2687_v14  ;;  %v2512_v19 = vadd.f32 %v2511_v50, %v2223_v63  ;;  %v1958_v14 = vadd.f32 %v4723_v42, %v4532_v25 }
 0x22b   : > { %v2225_v51 = vpop.f32.mrf.mxu1  ;;  %v2514_v4 = vpop.f32.mrf.mxu0 }
 0x22c   : > { %3008 = vst.msk [vmem:[%s4736_s20 + $0x64] sm:$0xf] %vm2982_vm0, %v3505_v44  ;;  %v2688_v45 = vmax.f32 %v2512_v19, 0.0  ;;  %v2226_v43 = vadd.f32 %v2225_v51, %v1937_v0 }
 0x22d   : > { %v2227_v23 = vpop.f32.mrf.mxu1  ;;  %v2516_v39 = vpop.f32.mrf.mxu0 }
 0x22e   : > { %v3506_v8 = vpack.c.bf16 %v2688_v45, %v2688_v45  ;;  %v2515_v5 = vadd.f32 %v2514_v4, %v2226_v43  ;;  %v1961_v4 = vadd.f32 %v4723_v42, %v4536_v28 }
 0x22f   : > { %v2230_v7 = vpop.f32.mrf.mxu1  ;;  %v2519_v34 = vpop.f32.mrf.mxu0 }
 0x230   : > { %3009 = vst.msk [vmem:[%s4736_s20 + $0x68] sm:$0xf] %vm2982_vm0, %v3506_v8  ;;  %v2689_v6 = vmax.f32 %v2515_v5, 0.0  ;;  %v2231_v22 = vadd.f32 %v2230_v7, %v1942_v16  ;;  %v1966_v7 = vadd.f32 %v4723_v42, %v4544_v36 }
 0x231   : > { %v2232_v53 = vpop.f32.mrf.mxu1  ;;  %v2521_v59 = vpop.f32.mrf.mxu0 }
 0x232   : > { %v3507_v54 = vpack.c.bf16 %v2689_v6, %v2689_v6  ;;  %v2520_v31 = vadd.f32 %v2519_v34, %v2231_v22 }
 0x233   : > { %v2233_v32 = vpop.f32.mrf.mxu1  ;;  %v2522_v26 = vpop.f32.mrf.mxu0 }
 0x234   : > { %3010 = vst.msk [vmem:[%s4736_s20 + $0x6c] sm:$0xf] %vm2982_vm0, %v3507_v54  ;;  %v2690_v18 = vmax.f32 %v2520_v31, 0.0  ;;  %v2234_v47 = vadd.f32 %v2233_v32, %v1945_v55  ;;  %v1969_v31 = vadd.f32 %v4723_v42, %v4548_v40 }
 0x235   : > { %v2235_v33 = vpop.f32.mrf.mxu1  ;;  %v2524_v35 = vpop.f32.mrf.mxu0 }
 0x236   : > { %v3508_v30 = vpack.c.bf16 %v2690_v18, %v2690_v18  ;;  %v2523_v17 = vadd.f32 %v2522_v26, %v2234_v47 }
 0x237   : > { %v2238_v15 = vpop.f32.mrf.mxu1  ;;  %v2527_v41 = vpop.f32.mrf.mxu0 }
 0x238   : > { %3011 = vst.msk [vmem:[%s4736_s20 + $0x70] sm:$0xf] %vm2982_vm0, %v3508_v30  ;;  %v2691_v49 = vmax.f32 %v2523_v17, 0.0  ;;  %v2239_v37 = vadd.f32 %v2238_v15, %v1950_v62  ;;  %v1974_v30 = vadd.f32 %v4723_v42, %v4556_v48 }
 0x239   : > { %v2240_v61 = vpop.f32.mrf.mxu1  ;;  %v2529_v2 = vpop.f32.mrf.mxu0 }
 0x23a   : > { %v3509_v12 = vpack.c.bf16 %v2691_v49, %v2691_v49  ;;  %v2528_v11 = vadd.f32 %v2527_v41, %v2239_v37 }
 0x23b   : > { %v2241_v46 = vpop.f32.mrf.mxu1  ;;  %v2530_v58 = vpop.f32.mrf.mxu0 }
 0x23c   : > { %3012 = vst.msk [vmem:[%s4736_s20 + $0x74] sm:$0xf] %vm2982_vm0, %v3509_v12  ;;  %v2692_v3 = vmax.f32 %v2528_v11, 0.0  ;;  %v2242_v56 = vadd.f32 %v2241_v46, %v1953_v24  ;;  %v1977_v24 = vadd.f32 %v4723_v42, %v4560_v52 }
 0x23d   : > { %v2243_v57 = vpop.f32.mrf.mxu1  ;;  %v2532_v50 = vpop.f32.mrf.mxu0 }
 0x23e   : > { %v3510_v63 = vpack.c.bf16 %v2692_v3, %v2692_v3  ;;  %v2531_v10 = vadd.f32 %v2530_v58, %v2242_v56  ;;  %v1982_v50 = vadd.f32 %v4723_v42, %v4568_v60 }
 0x23f   : > { %v2246_v20 = vpop.f32.mrf.mxu1  ;;  %v2535_v0 = vpop.f32.mrf.mxu0 }
 0x240   : > { %3013 = vst.msk [vmem:[%s4736_s20 + $0x78] sm:$0xf] %vm2982_vm0, %v3510_v63  ;;  %v2693_v29 = vmax.f32 %v2531_v10, 0.0  ;;  %v2247_v44 = vadd.f32 %v2246_v20, %v1958_v14 }
 0x241   : > { %v2248_v19 = vpop.f32.mrf.mxu1  ;;  %v2537_v51 = vpop.f32.mrf.mxu0 }
 0x242   : > { %v3511_v45 = vpack.c.bf16 %v2693_v29, %v2693_v29  ;;  %v2536_v43 = vadd.f32 %v2535_v0, %v2247_v44  ;;  %v1985_v19 = vadd.f32 %v4723_v42, %v4572_v1 }
 0x243   : > { %v2249_v23 = vpop.f32.mrf.mxu1  ;;  %v2538_v39 = vpop.f32.mrf.mxu0 }
 0x244   : > { %3014 = vst.msk [vmem:[%s4736_s20 + $0x7c] sm:$0xf] %vm2982_vm0, %v3511_v45  ;;  %v2694_v25 = vmax.f32 %v2536_v43, 0.0  ;;  %v2250_v16 = vadd.f32 %v2249_v23, %v1961_v4 }
 0x245   : > { %v2251_v8 = vpop.f32.mrf.mxu1  ;;  %v2540_v5 = vpop.f32.mrf.mxu0 }
 0x246   : > { %v3512_v34 = vpack.c.bf16 %v2694_v25, %v2694_v25  ;;  %v2539_v6 = vadd.f32 %v2538_v39, %v2250_v16  ;;  %v1990_v16 = vadd.f32 %v4723_v42, %v4580_v9 }
 0x247   : > { %v2254_v22 = vpop.f32.mrf.mxu1  ;;  %v2543_v53 = vpop.f32.mrf.mxu0 }
 0x248   : > { %3015 = vst.msk [vmem:[%s4736_s20 + $0x80] sm:$0xf] %vm2982_vm0, %v3512_v34  ;;  %v2695_v28 = vmax.f32 %v2539_v6, 0.0  ;;  %v2255_v59 = vadd.f32 %v2254_v22, %v1966_v7 }
 0x249   : > { %v2256_v55 = vpop.f32.mrf.mxu1  ;;  %v2545_v54 = vpop.f32.mrf.mxu0 }
 0x24a   : > { %v3513_v32 = vpack.c.bf16 %v2695_v28, %v2695_v28  ;;  %v2544_v26 = vadd.f32 %v2543_v53, %v2255_v59  ;;  %v1993_v28 = vadd.f32 %v4723_v42, %v4584_v13 }
 0x24b   : > { %v2257_v18 = vpop.f32.mrf.mxu1  ;;  %v2546_v47 = vpop.f32.mrf.mxu0 }
 0x24c   : > { %3016 = vst.msk [vmem:[%s4736_s20 + $0x84] sm:$0xf] %vm2982_vm0, %v3513_v32  ;;  %v2696_v36 = vmax.f32 %v2544_v26, 0.0  ;;  %v2258_v33 = vadd.f32 %v2257_v18, %v1969_v31 }
 0x24d   : > { %v2259_v35 = vpop.f32.mrf.mxu1  ;;  %v2548_v62 = vpop.f32.mrf.mxu0 }
 0x24e   : > { %v3514_v17 = vpack.c.bf16 %v2696_v36, %v2696_v36  ;;  %v2547_v15 = vadd.f32 %v2546_v47, %v2258_v33  ;;  %v1998_v47 = vadd.f32 %v4723_v42, %v4592_v21 }
 0x24f   : > { %v2262_v41 = vpop.f32.mrf.mxu1  ;;  %v2551_v49 = vpop.f32.mrf.mxu0 }
 0x250   : > { %3017 = vst.msk [vmem:[%s4736_s20 + $0x88] sm:$0xf] %vm2982_vm0, %v3514_v17  ;;  %v2697_v40 = vmax.f32 %v2547_v15, 0.0  ;;  %v2263_v37 = vadd.f32 %v2262_v41, %v1974_v30  ;;  %v2001_v41 = vadd.f32 %v4723_v42, %v4596_v27 }
 0x251   : > { %v2264_v61 = vpop.f32.mrf.mxu1  ;;  %v2553_v2 = vpop.f32.mrf.mxu0 }
 0x252   : > { %v3515_v12 = vpack.c.bf16 %v2697_v40, %v2697_v40  ;;  %v2552_v11 = vadd.f32 %v2551_v49, %v2263_v37 }
 0x253   : > { %v2265_v46 = vpop.f32.mrf.mxu1  ;;  %v2554_v58 = vpop.f32.mrf.mxu0 }
 0x254   : > { %3018 = vst.msk [vmem:[%s4736_s20 + $0x8c] sm:$0xf] %vm2982_vm0, %v3515_v12  ;;  %v2698_v48 = vmax.f32 %v2552_v11, 0.0  ;;  %v2266_v3 = vadd.f32 %v2265_v46, %v1977_v24  ;;  %v2006_v11 = vadd.f32 %v4723_v42, %v4604_v38 }
 0x255   : > { %v2267_v56 = vpop.f32.mrf.mxu1  ;;  %v2556_v57 = vpop.f32.mrf.mxu0 }
 0x256   : > { %v3516_v14 = vpack.c.bf16 %v2698_v48, %v2698_v48  ;;  %v2555_v63 = vadd.f32 %v2554_v58, %v2266_v3 }
 0x257   : > { %v2270_v10 = vpop.f32.mrf.mxu1  ;;  %v2559_v20 = vpop.f32.mrf.mxu0 }
 0x258   : > { %3019 = vst.msk [vmem:[%s4736_s20 + $0x90] sm:$0xf] %vm2982_vm0, %v3516_v14  ;;  %v2699_v52 = vmax.f32 %v2555_v63, 0.0  ;;  %v2271_v0 = vadd.f32 %v2270_v10, %v1982_v50  ;;  %v5064_v14 = vld [vmem:[#allocation8_spill] sm:$0xff] }
 0x259   : > { %v2272_v29 = vpop.f32.mrf.mxu1  ;;  %v2561_v44 = vpop.f32.mrf.mxu0  ;;  %v2009_v63 = vadd.f32 %v4723_v42, %v5064_v14 }
 0x25a   : > { %v3517_v51 = vpack.c.bf16 %v2699_v52, %v2699_v52  ;;  %v2560_v4 = vadd.f32 %v2559_v20, %v2271_v0 }
 0x25b   : > { %v2273_v45 = vpop.f32.mrf.mxu1  ;;  %v2562_v43 = vpop.f32.mrf.mxu0 }
 0x25c   : > { %3020 = vst.msk [vmem:[%s4736_s20 + $0x94] sm:$0xf] %vm2982_vm0, %v3517_v51  ;;  %v2700_v60 = vmax.f32 %v2560_v4, 0.0  ;;  %v2274_v23 = vadd.f32 %v2273_v45, %v1985_v19  ;;  %v4936_v51 = vld [vmem:[#allocation4] ss:$0 sm:$0xff]  ;;  %v5065_v4 = vld [vmem:[#allocation9_spill] sm:$0xff] }
 0x25d   : > { %v2275_v39 = vpop.f32.mrf.mxu1  ;;  %v2564_v25 = vpop.f32.mrf.mxu0  ;;  %v2014_v45 = vadd.f32 %v4936_v51, %v5065_v4 }
 0x25e   : > { %v3518_v8 = vpack.c.bf16 %v2700_v60, %v2700_v60  ;;  %v2563_v5 = vadd.f32 %v2562_v43, %v2274_v23 }
 0x25f   : > { %v2278_v7 = vpop.f32.mrf.mxu1  ;;  %v2567_v34 = vpop.f32.mrf.mxu0 }
 0x260   : > { %3021 = vst.msk [vmem:[%s4736_s20 + $0x98] sm:$0xf] %vm2982_vm0, %v3518_v8  ;;  %v2701_v1 = vmax.f32 %v2563_v5, 0.0  ;;  %v2279_v6 = vadd.f32 %v2278_v7, %v1990_v16  ;;  %v5066_v5 = vld [vmem:[#allocation10_spill] sm:$0xff] }
 0x261   : > { %v2280_v22 = vpop.f32.mrf.mxu1  ;;  %v2569_v53 = vpop.f32.mrf.mxu0  ;;  %v2017_v7 = vadd.f32 %v4936_v51, %v5066_v5 }
 0x262   : > { %v3519_v59 = vpack.c.bf16 %v2701_v1, %v2701_v1  ;;  %v2568_v55 = vadd.f32 %v2567_v34, %v2279_v6 }
 0x263   : > { %v2281_v54 = vpop.f32.mrf.mxu1  ;;  %v2570_v31 = vpop.f32.mrf.mxu0 }
 0x264   : > { %3022 = vst.msk [vmem:[%s4736_s20 + $0x9c] sm:$0xf] %vm2982_vm0, %v3519_v59  ;;  %v2702_v9 = vmax.f32 %v2568_v55, 0.0  ;;  %v2282_v32 = vadd.f32 %v2281_v54, %v1993_v28  ;;  %v5067_v54 = vld [vmem:[#allocation11_spill] sm:$0xff] }
 0x265   : > { %v2283_v26 = vpop.f32.mrf.mxu1  ;;  %v2572_v18 = vpop.f32.mrf.mxu0 }
 0x266   : > { %v3520_v36 = vpack.c.bf16 %v2702_v9, %v2702_v9  ;;  %v2571_v33 = vadd.f32 %v2570_v31, %v2282_v32  ;;  %v2022_v31 = vadd.f32 %v4936_v51, %v5067_v54 }
 0x267   : > { %v2286_v35 = vpop.f32.mrf.mxu1  ;;  %v2575_v62 = vpop.f32.mrf.mxu0 }
 0x268   : > { %3023 = vst.msk [vmem:[%s4736_s20 + $0xa0] sm:$0xf] %vm2982_vm0, %v3520_v36  ;;  %v2703_v13 = vmax.f32 %v2571_v33, 0.0  ;;  %v2287_v30 = vadd.f32 %v2286_v35, %v1998_v47 }
 0x269   : > { %v2288_v17 = vpop.f32.mrf.mxu1  ;;  %v2577_v15 = vpop.f32.mrf.mxu0 }
 0x26a   : > { %v3521_v49 = vpack.c.bf16 %v2703_v13, %v2703_v13  ;;  %v2576_v40 = vadd.f32 %v2575_v62, %v2287_v30  ;;  %v5068_v62 = vld [vmem:[#allocation12_spill] sm:$0xff] }
 0x26b   : > { %v2289_v37 = vpop.f32.mrf.mxu1  ;;  %v2578_v61 = vpop.f32.mrf.mxu0  ;;  %v2025_v13 = vadd.f32 %v4936_v51, %v5068_v62 }
 0x26c   : > { %3024 = vst.msk [vmem:[%s4736_s20 + $0xa4] sm:$0xf] %vm2982_vm0, %v3521_v49  ;;  %v2704_v21 = vmax.f32 %v2576_v40, 0.0  ;;  %v2290_v2 = vadd.f32 %v2289_v37, %v2001_v41 }
 0x26d   : > { %v2291_v24 = vpop.f32.mrf.mxu1  ;;  %v2580_v12 = vpop.f32.mrf.mxu0 }
 0x26e   : > { %v3522_v46 = vpack.c.bf16 %v2704_v21, %v2704_v21  ;;  %v2579_v58 = vadd.f32 %v2578_v61, %v2290_v2  ;;  %v5069_v21 = vld [vmem:[#allocation13_spill] sm:$0xff] }
 0x26f   : > { %v2294_v48 = vpop.f32.mrf.mxu1  ;;  %v2583_v3 = vpop.f32.mrf.mxu0  ;;  %v2030_v2 = vadd.f32 %v4936_v51, %v5069_v21 }
 0x270   : > { %3025 = vst.msk [vmem:[%s4736_s20 + $0xa8] sm:$0xf] %vm2982_vm0, %v3522_v46  ;;  %v2705_v27 = vmax.f32 %v2579_v58, 0.0  ;;  %v2295_v56 = vadd.f32 %v2294_v48, %v2006_v11 }
 0x271   : > { %v2296_v57 = vpop.f32.mrf.mxu1  ;;  %v2585_v50 = vpop.f32.mrf.mxu0 }
 0x272   : > { %v3523_v10 = vpack.c.bf16 %v2705_v27, %v2705_v27  ;;  %v2584_v20 = vadd.f32 %v2583_v3, %v2295_v56  ;;  %v5070_v56 = vld [vmem:[#allocation14_spill] sm:$0xff] }
 0x273   : > { %v2297_v52 = vpop.f32.mrf.mxu1  ;;  %v2586_v0 = vpop.f32.mrf.mxu0  ;;  %v2033_v57 = vadd.f32 %v4936_v51, %v5070_v56 }
 0x274   : > { %3026 = vst.msk [vmem:[%s4736_s20 + $0xac] sm:$0xf] %vm2982_vm0, %v3523_v10  ;;  %v2706_v38 = vmax.f32 %v2584_v20, 0.0  ;;  %v2298_v29 = vadd.f32 %v2297_v52, %v2009_v63 }
 0x275   : > { %v2299_v44 = vpop.f32.mrf.mxu1  ;;  %v2588_v19 = vpop.f32.mrf.mxu0 }
 0x276   : > { %v3524_v43 = vpack.c.bf16 %v2706_v38, %v2706_v38  ;;  %v2587_v60 = vadd.f32 %v2586_v0, %v2298_v29  ;;  %v5071_v29 = vld [vmem:[#allocation15_spill] sm:$0xff] }
 0x277   : > { %v2302_v42 = vpop.f32.mrf.mxu1  ;;  %v2591_v23 = vpop.f32.mrf.mxu0  ;;  %v2038_v44 = vadd.f32 %v4936_v51, %v5071_v29 }
 0x278   : > { %3027 = vst.msk [vmem:[%s4736_s20 + $0xb0] sm:$0xf] %vm2982_vm0, %v3524_v43  ;;  %v2707_v39 = vmax.f32 %v2587_v60, 0.0  ;;  %v2303_v25 = vadd.f32 %v2302_v42, %v2014_v45 }
 0x279   : > { %v2304_v16 = vpop.f32.mrf.mxu1  ;;  %v2593_v8 = vpop.f32.mrf.mxu0 }
 0x27a   : > { %v3525_v34 = vpack.c.bf16 %v2707_v39, %v2707_v39  ;;  %v2592_v1 = vadd.f32 %v2591_v23, %v2303_v25  ;;  %v5072_v25 = vld [vmem:[#allocation16_spill] sm:$0xff] }
 0x27b   : > { %v2305_v6 = vpop.f32.mrf.mxu1  ;;  %v2594_v22 = vpop.f32.mrf.mxu0  ;;  %v2041_v16 = vadd.f32 %v4936_v51, %v5072_v25 }
 0x27c   : > { %3028 = vst.msk [vmem:[%s4736_s20 + $0xb4] sm:$0xf] %vm2982_vm0, %v3525_v34  ;;  %v2708_v53 = vmax.f32 %v2592_v1, 0.0  ;;  %v2306_v28 = vadd.f32 %v2305_v6, %v2017_v7 }
 0x27d   : > { %v2307_v59 = vpop.f32.mrf.mxu1  ;;  %v2596_v55 = vpop.f32.mrf.mxu0 }
 0x27e   : > { %v3526_v9 = vpack.c.bf16 %v2708_v53, %v2708_v53  ;;  %v2595_v32 = vadd.f32 %v2594_v22, %v2306_v28  ;;  %v5073_v28 = vld [vmem:[#allocation17_spill] sm:$0xff] }
 0x27f   : > { %v2310_v26 = vpop.f32.mrf.mxu1  ;;  %v2599_v18 = vpop.f32.mrf.mxu0  ;;  %v2046_v59 = vadd.f32 %v4936_v51, %v5073_v28 }
 0x280   : > { %3029 = vst.msk [vmem:[%s4736_s20 + $0xb8] sm:$0xf] %vm2982_vm0, %v3526_v9  ;;  %v2709_v47 = vmax.f32 %v2595_v32, 0.0  ;;  %v2311_v36 = vadd.f32 %v2310_v26, %v2022_v31 }
 0x281   : > { %v2312_v33 = vpop.f32.mrf.mxu1  ;;  %v2601_v35 = vpop.f32.mrf.mxu0 }
 0x282   : > { %v3527_v30 = vpack.c.bf16 %v2709_v47, %v2709_v47  ;;  %v2600_v17 = vadd.f32 %v2599_v18, %v2311_v36  ;;  %v5074_v36 = vld [vmem:[#allocation18_spill] sm:$0xff] }
 0x283   : > { %v2313_v15 = vpop.f32.mrf.mxu1  ;;  %v2602_v41 = vpop.f32.mrf.mxu0  ;;  %v2049_v33 = vadd.f32 %v4936_v51, %v5074_v36 }
 0x284   : > { %3030 = vst.msk [vmem:[%s4736_s20 + $0xbc] sm:$0xf] %vm2982_vm0, %v3527_v30  ;;  %v2710_v49 = vmax.f32 %v2600_v17, 0.0  ;;  %v2314_v40 = vadd.f32 %v2313_v15, %v2025_v13 }
 0x285   : > { %v2315_v37 = vpop.f32.mrf.mxu1  ;;  %v2604_v61 = vpop.f32.mrf.mxu0 }
 0x286   : > { %v3528_v24 = vpack.c.bf16 %v2710_v49, %v2710_v49  ;;  %v2603_v12 = vadd.f32 %v2602_v41, %v2314_v40  ;;  %v5075_v40 = vld [vmem:[#allocation19_spill] sm:$0xff] }
 0x287   : > { %v2318_v11 = vpop.f32.mrf.mxu1  ;;  %v2607_v46 = vpop.f32.mrf.mxu0  ;;  %v2054_v37 = vadd.f32 %v4936_v51, %v5075_v40 }
 0x288   : > { %3031 = vst.msk [vmem:[%s4736_s20 + $0xc0] sm:$0xf] %vm2982_vm0, %v3528_v24  ;;  %v2711_v58 = vmax.f32 %v2603_v12, 0.0  ;;  %v2319_v48 = vadd.f32 %v2318_v11, %v2030_v2 }
 0x289   : > { %v2320_v3 = vpop.f32.mrf.mxu1  ;;  %v2609_v27 = vpop.f32.mrf.mxu0 }
 0x28a   : > { %v3529_v50 = vpack.c.bf16 %v2711_v58, %v2711_v58  ;;  %v2608_v14 = vadd.f32 %v2607_v46, %v2319_v48  ;;  %v5076_v48 = vld [vmem:[#allocation20_spill] sm:$0xff] }
 0x28b   : > { %v2321_v63 = vpop.f32.mrf.mxu1  ;;  %v2610_v10 = vpop.f32.mrf.mxu0  ;;  %v2057_v3 = vadd.f32 %v4936_v51, %v5076_v48 }
 0x28c   : > { %3032 = vst.msk [vmem:[%s4736_s20 + $0xc4] sm:$0xf] %vm2982_vm0, %v3529_v50  ;;  %v2712_v20 = vmax.f32 %v2608_v14, 0.0  ;;  %v2322_v52 = vadd.f32 %v2321_v63, %v2033_v57 }
 0x28d   : > { %v2323_v0 = vpop.f32.mrf.mxu1  ;;  %v2612_v38 = vpop.f32.mrf.mxu0 }
 0x28e   : > { %v3530_v19 = vpack.c.bf16 %v2712_v20, %v2712_v20  ;;  %v2611_v4 = vadd.f32 %v2610_v10, %v2322_v52  ;;  %v5077_v52 = vld [vmem:[#allocation21_spill] sm:$0xff] }
 0x28f   : > { %v2326_v45 = vpop.f32.mrf.mxu1  ;;  %v2615_v43 = vpop.f32.mrf.mxu0  ;;  %v2062_v0 = vadd.f32 %v4936_v51, %v5077_v52 }
 0x290   : > { %3033 = vst.msk [vmem:[%s4736_s20 + $0xc8] sm:$0xf] %vm2982_vm0, %v3530_v19  ;;  %v2713_v60 = vmax.f32 %v2611_v4, 0.0  ;;  %v2327_v42 = vadd.f32 %v2326_v45, %v2038_v44 }
 0x291   : > { %v2328_v23 = vpop.f32.mrf.mxu1  ;;  %v2617_v39 = vpop.f32.mrf.mxu0 }
 0x292   : > { %v3531_v8 = vpack.c.bf16 %v2713_v60, %v2713_v60  ;;  %v2616_v5 = vadd.f32 %v2615_v43, %v2327_v42  ;;  %v5078_v42 = vld [vmem:[#allocation22_spill] sm:$0xff] }
 0x293   : > { %v2329_v7 = vpop.f32.mrf.mxu1  ;;  %v2618_v34 = vpop.f32.mrf.mxu0  ;;  %v2065_v23 = vadd.f32 %v4936_v51, %v5078_v42 }
 0x294   : > { %3034 = vst.msk [vmem:[%s4736_s20 + $0xcc] sm:$0xf] %vm2982_vm0, %v3531_v8  ;;  %v2714_v1 = vmax.f32 %v2616_v5, 0.0  ;;  %v2330_v6 = vadd.f32 %v2329_v7, %v2041_v16 }
 0x295   : > { %v2331_v22 = vpop.f32.mrf.mxu1  ;;  %v2620_v53 = vpop.f32.mrf.mxu0 }
 0x296   : > { %v3532_v55 = vpack.c.bf16 %v2714_v1, %v2714_v1  ;;  %v2619_v54 = vadd.f32 %v2618_v34, %v2330_v6  ;;  %v5079_v6 = vld [vmem:[#allocation23_spill] sm:$0xff] }
 0x297   : > { %v2334_v31 = vpop.f32.mrf.mxu1  ;;  %v2623_v9 = vpop.f32.mrf.mxu0  ;;  %v2070_v22 = vadd.f32 %v4936_v51, %v5079_v6 }
 0x298   : > { %3035 = vst.msk [vmem:[%s4736_s20 + $0xd0] sm:$0xf] %vm2982_vm0, %v3532_v55  ;;  %v2715_v32 = vmax.f32 %v2619_v54, 0.0  ;;  %v2335_v26 = vadd.f32 %v2334_v31, %v2046_v59 }
 0x299   : > { %v2336_v18 = vpop.f32.mrf.mxu1  ;;  %v2625_v47 = vpop.f32.mrf.mxu0 }
 0x29a   : > { %v3533_v35 = vpack.c.bf16 %v2715_v32, %v2715_v32  ;;  %v2624_v62 = vadd.f32 %v2623_v9, %v2335_v26  ;;  %v5080_v26 = vld [vmem:[#allocation24_spill] sm:$0xff] }
 0x29b   : > { %v2337_v13 = vpop.f32.mrf.mxu1  ;;  %v2626_v30 = vpop.f32.mrf.mxu0  ;;  %v2073_v18 = vadd.f32 %v4936_v51, %v5080_v26 }
 0x29c   : > { %3036 = vst.msk [vmem:[%s4736_s20 + $0xd4] sm:$0xf] %vm2982_vm0, %v3533_v35  ;;  %v2716_v17 = vmax.f32 %v2624_v62, 0.0  ;;  %v2338_v15 = vadd.f32 %v2337_v13, %v2049_v33 }
 0x29d   : > { %v2339_v41 = vpop.f32.mrf.mxu1  ;;  %v2628_v49 = vpop.f32.mrf.mxu0 }
 0x29e   : > { %v3534_v61 = vpack.c.bf16 %v2716_v17, %v2716_v17  ;;  %v2627_v21 = vadd.f32 %v2626_v30, %v2338_v15  ;;  %v5081_v15 = vld [vmem:[#allocation25_spill] sm:$0xff] }
 0x29f   : > { %v2342_v2 = vpop.f32.mrf.mxu1  ;;  %v2631_v24 = vpop.f32.mrf.mxu0  ;;  %v2078_v41 = vadd.f32 %v4936_v51, %v5081_v15 }
 0x2a0   : > { %3037 = vst.msk [vmem:[%s4736_s20 + $0xd8] sm:$0xf] %vm2982_vm0, %v3534_v61  ;;  %v2717_v12 = vmax.f32 %v2627_v21, 0.0  ;;  %v2343_v11 = vadd.f32 %v2342_v2, %v2054_v37 }
 0x2a1   : > { %v2344_v46 = vpop.f32.mrf.mxu1  ;;  %v2633_v58 = vpop.f32.mrf.mxu0 }
 0x2a2   : > { %v3535_v27 = vpack.c.bf16 %v2717_v12, %v2717_v12  ;;  %v2632_v56 = vadd.f32 %v2631_v24, %v2343_v11  ;;  %v5082_v11 = vld [vmem:[#allocation26_spill] sm:$0xff] }
 0x2a3   : > { %v2345_v57 = vpop.f32.mrf.mxu1  ;;  %v2634_v50 = vpop.f32.mrf.mxu0  ;;  %v2081_v46 = vadd.f32 %v4936_v51, %v5082_v11 }
 0x2a4   : > { %3038 = vst.msk [vmem:[%s4736_s20 + $0xdc] sm:$0xf] %vm2982_vm0, %v3535_v27  ;;  %v2718_v14 = vmax.f32 %v2632_v56, 0.0  ;;  %v2346_v63 = vadd.f32 %v2345_v57, %v2057_v3 }
 0x2a5   : > { %v2347_v10 = vpop.f32.mrf.mxu1  ;;  %v2636_v20 = vpop.f32.mrf.mxu0 }
 0x2a6   : > { %v3536_v38 = vpack.c.bf16 %v2718_v14, %v2718_v14  ;;  %v2635_v29 = vadd.f32 %v2634_v50, %v2346_v63 }
 0x2a7   : > { %v2350_v44 = vpop.f32.mrf.mxu1  ;;  %v2639_v19 = vpop.f32.mrf.mxu0 }
 0x2a8   : > { %3039 = vst.msk [vmem:[%s4736_s20 + $0xe0] sm:$0xf] %vm2982_vm0, %v3536_v38  ;;  %v2719_v4 = vmax.f32 %v2635_v29, 0.0  ;;  %v2351_v45 = vadd.f32 %v2350_v44, %v2062_v0 }
 0x2a9   : > { %v2352_v43 = vpop.f32.mrf.mxu1  ;;  %v2641_v60 = vpop.f32.mrf.mxu0 }
 0x2aa   : > { %v3537_v39 = vpack.c.bf16 %v2719_v4, %v2719_v4  ;;  %v2640_v25 = vadd.f32 %v2639_v19, %v2351_v45 }
 0x2ab   : > { %v2353_v16 = vpop.f32.mrf.mxu1  ;;  %v2642_v8 = vpop.f32.mrf.mxu0 }
 0x2ac   : > { %3040 = vst.msk [vmem:[%s4736_s20 + $0xe4] sm:$0xf] %vm2982_vm0, %v3537_v39  ;;  %v2720_v5 = vmax.f32 %v2640_v25, 0.0  ;;  %v2354_v7 = vadd.f32 %v2353_v16, %v2065_v23 }
 0x2ad   : > { %v2355_v34 = vpop.f32.mrf.mxu1  ;;  %v2644_v1 = vpop.f32.mrf.mxu0 }
 0x2ae   : > { %v3538_v53 = vpack.c.bf16 %v2720_v5, %v2720_v5  ;;  %v2643_v28 = vadd.f32 %v2642_v8, %v2354_v7 }
 0x2af   : > { %v2358_v59 = vpop.f32.mrf.mxu1  ;;  %v2647_v55 = vpop.f32.mrf.mxu0 }
 0x2b0   : > { %3041 = vst.msk [vmem:[%s4736_s20 + $0xe8] sm:$0xf] %vm2982_vm0, %v3538_v53  ;;  %v2721_v54 = vmax.f32 %v2643_v28, 0.0  ;;  %v2359_v31 = vadd.f32 %v2358_v59, %v2070_v22 }
 0x2b1   : > { %v2360_v9 = vpop.f32.mrf.mxu1  ;;  %v2649_v32 = vpop.f32.mrf.mxu0 }
 0x2b2   : > { %v3539_v47 = vpack.c.bf16 %v2721_v54, %v2721_v54  ;;  %v2648_v36 = vadd.f32 %v2647_v55, %v2359_v31 }
 0x2b3   : > { %v2361_v33 = vpop.f32.mrf.mxu1  ;;  %v2650_v35 = vpop.f32.mrf.mxu0 }
 0x2b4   : > { %3042 = vst.msk [vmem:[%s4736_s20 + $0xec] sm:$0xf] %vm2982_vm0, %v3539_v47  ;;  %v2722_v62 = vmax.f32 %v2648_v36, 0.0  ;;  %v2362_v13 = vadd.f32 %v2361_v33, %v2073_v18 }
 0x2b5   : > { %v2363_v30 = vpop.f32.mrf.mxu1  ;;  %v2652_v17 = vpop.f32.mrf.mxu0 }
 0x2b6   : > { %v3540_v49 = vpack.c.bf16 %v2722_v62, %v2722_v62  ;;  %v2651_v40 = vadd.f32 %v2650_v35, %v2362_v13 }
 0x2b7   : > { %v2366_v37 = vpop.f32.mrf.mxu1  ;;  %v2655_v61 = vpop.f32.mrf.mxu0 }
 0x2b8   : > { %3043 = vst.msk [vmem:[%s4736_s20 + $0xf0] sm:$0xf] %vm2982_vm0, %v3540_v49  ;;  %v2723_v21 = vmax.f32 %v2651_v40, 0.0  ;;  %v2367_v2 = vadd.f32 %v2366_v37, %v2078_v41 }
 0x2b9   : > { %v2368_v24 = vpop.f32.mrf.mxu1  ;;  %v2657_v12 = vpop.f32.mrf.mxu0 }
 0x2ba   : > { %v3541_v58 = vpack.c.bf16 %v2723_v21, %v2723_v21  ;;  %v2656_v48 = vadd.f32 %v2655_v61, %v2367_v2 }
 0x2bb   : > { %v2369_v3 = vpop.f32.mrf.mxu1  ;;  %v2658_v27 = vpop.f32.mrf.mxu0 }
 0x2bc   : > { %3044 = vst.msk [vmem:[%s4736_s20 + $0xf4] sm:$0xf] %vm2982_vm0, %v3541_v58  ;;  %v2724_v56 = vmax.f32 %v2656_v48, 0.0  ;;  %v2370_v57 = vadd.f32 %v2369_v3, %v2081_v46 }
 0x2bd   : > { %v2371_v50 = vpop.f32.mrf.mxu1  ;;  %v2660_v14 = vpop.f32.mrf.mxu0 }
 0x2be   : > { %v3542_v63 = vpack.c.bf16 %v2724_v56, %v2724_v56  ;;  %v2659_v10 = vadd.f32 %v2658_v27, %v2370_v57 }
 0x2c0   : > { %3045 = vst.msk [vmem:[%s4736_s20 + $0xf8] sm:$0xf] %vm2982_vm0, %v3542_v63  ;;  %v2725_v20 = vmax.f32 %v2659_v10, 0.0 }
 0x2c2   : > { %v3543_v52 = vpack.c.bf16 %v2725_v20, %v2725_v20 }
 0x2c4   : > { %3046 = vst.msk [vmem:[%s4736_s20 + $0xfc] sm:$0xf] %vm2982_vm0, %v3543_v52 }
 0x2c5 PF: > { %s17_s17 = sadd.s32 1, %s4093_s17   ;;  %s5083_s12 = smov %s4077_s13 }
 0x2c6   : > { %p14_p12 = scmp.ge.s32.totalorder %s17_s17, 4   ;;  %s5084_s13 = smov %s4081_s14 }
 0x2c7   : > { %s5085_s14 = smov %s4205_s5  ;;  %s5086_s15 = smov %s4089_s16 }
 0x2c8   : > { %s5087_s16 = smov %s5089_s4  ;;  %16 = sbr.rel (!%p14_p12) target bundleno = 5 (0x5), region = 80 }
 0x2cd   :  { %3075 = vsyncpa [#allocation3], 1 }
 0x2ce   :  { %3077 = vsyncpa [#allocation3 + $0x1], 1 }
 0x2cf   :  { %3078 = vsyncpa [#allocation5], 1 }

</bundles_post_ra>
